<compile_context>
chip_gen: v6e
topology: v6e:2x2x1
jax: 0.10.0
libtpu: 0.0.40
codegen_flags: <defaults>
</compile_context>

<pallas_src>
import functools

import jax
import jax.numpy as jnp
from jax.experimental import pallas as pl
from jax.experimental.pallas import tpu as pltpu

EPS = 1e-5
DEFAULT_TILE_N = 8192                  # rows per grid step
VMEM_LIMIT_BYTES = 48 * 1024 * 1024    # fits v7x's 64 MiB/TC; raise on v5e/v6e
FUSED_STAGE_BYTES = 16 * 1024 * 1024   # VMEM budget for the staged copy of x

# dot_general dimension numbers for "A @ B^T" (contract the last dim of both).
_DN_NT = (((1,), (1,)), ((), ()))


def _round_up(x, m):
    return (x + m - 1) // m * m


def _ff_tile(x, w1f, b1f, w2, b2, matmul_dtype):
    """relu(x @ w1f^T + b1f) @ w2^T + b2 + x on one row-major [tile, D] block.

    Dropout(p=0.0) of the reference module is the identity.  BatchNorm is
    already folded into (w1f, b1f).  f32 accumulation; residual in f32.
    """
    xf = x.astype(jnp.float32)
    h1 = jax.lax.dot_general(x.astype(matmul_dtype), w1f.astype(matmul_dtype),
                             _DN_NT, preferred_element_type=jnp.float32)
    h1 = jnp.maximum(h1 + b1f, 0.0)
    y = jax.lax.dot_general(h1.astype(matmul_dtype), w2.astype(matmul_dtype),
                            _DN_NT, preferred_element_type=jnp.float32)
    return y + b2 + xf


# ---------------------------------------------------------------------------
# Fused path: one pallas_call, grid = (2 phases, row tiles).
#   phase 0: stage x tiles in VMEM + accumulate shifted BN statistics,
#            then fold BN into Linear1 (once).
#   phase 1: Linear -> ReLU -> Linear -> residual from the staged copy.
# ---------------------------------------------------------------------------
def _fused_mlp_kernel(x_ref, gamma_ref, beta_ref, w1_ref, b1_ref, w2_ref,
                      b2_ref, o_ref,
                      x_st, x0_sc, s1_sc, s2_sc, w1f_sc, b1f_sc,
                      *, n_rows, pad_rows, matmul_dtype):
    p = pl.program_id(0)          # 0: stage + stats, 1: apply
    j = pl.program_id(1)          # row-tile index
    nt = pl.num_programs(1)

    # ----------------- phase 0: stage + shifted statistics ------------------
    @pl.when(p == 0)
    def _():
        x = x_ref[...]                                       # [tile, D]

        @pl.when(j == 0)
        def _():
            x0_sc[...] = x[0:1, :].astype(jnp.float32)       # variance anchor
            s1_sc[...] = jnp.zeros_like(s1_sc)
            s2_sc[...] = jnp.zeros_like(s2_sc)

        x_st[j] = x                                          # staged VMEM copy
        d0 = x.astype(jnp.float32) - x0_sc[...]
        s1_sc[...] += jnp.sum(d0, axis=0, keepdims=True)
        s2_sc[...] += jnp.sum(d0 * d0, axis=0, keepdims=True)

        # Finalize: batch stats -> fold BatchNorm into Linear1 (W1', b1').
        @pl.when(j == nt - 1)
        def _():
            x0 = x0_sc[...]
            # Zero-padded rows contributed (-x0)/(+x0^2); remove analytically.
            s1 = s1_sc[...] + pad_rows * x0
            s2 = s2_sc[...] - pad_rows * (x0 * x0)
            inv_n = jnp.float32(1.0 / n_rows)
            mean = x0 + s1 * inv_n
            var = jnp.maximum(s2 * inv_n - (s1 * inv_n) ** 2, 0.0)
            rstd = jax.lax.rsqrt(var + EPS)
            scale = gamma_ref[...] * rstd                    # [1, D]
            shift = beta_ref[...] - mean * scale             # [1, D]
            w1 = w1_ref[...].astype(jnp.float32)             # [H, D]
            w1f_sc[...] = w1 * scale                         # column-scaled W1
            shift8 = jnp.broadcast_to(shift, (8, shift.shape[1]))
            b1f_sc[...] = b1_ref[...] + jax.lax.dot_general(
                shift8, w1, _DN_NT,
                preferred_element_type=jnp.float32)[0:1, :]  # [1, H]

    # ----------------- phase 1: MLP + residual from staged x ----------------
    @pl.when(p == 1)
    def _():
        o_ref[...] = _ff_tile(x_st[j], w1f_sc[...], b1f_sc[...], w2_ref[...],
                              b2_ref[...], matmul_dtype).astype(o_ref.dtype)


def _mlp_branch_fused(x, gamma, beta, w1, b1, w2, b2, *, tile, n_pad,
                      matmul_dtype):
    n, d = x.shape
    h_dim = w1.shape[0]
    nt = n_pad // tile
    x_p = jnp.pad(x, ((0, n_pad - n), (0, 0))) if n_pad != n else x

    row = lambda v: v.reshape(1, -1).astype(jnp.float32)
    const = lambda shape: pl.BlockSpec(shape, lambda p, j: (0, 0))

    cost = pl.CostEstimate(
        flops=4 * n_pad * d * h_dim,
        transcendentals=d,
        bytes_accessed=2 * n_pad * d * x.dtype.itemsize
        + 2 * d * h_dim * jnp.dtype(matmul_dtype).itemsize + 4 * (3 * d + h_dim))

    out = pl.pallas_call(
        functools.partial(_fused_mlp_kernel, n_rows=n,
                          pad_rows=float(n_pad - n), matmul_dtype=matmul_dtype),
        out_shape=jax.ShapeDtypeStruct((n_pad, d), x.dtype),
        grid=(2, nt),
        in_specs=[
            # x tiles stream in during phase 0 only; index stays constant in
            # phase 1 so they are not re-fetched (phase 1 reads the VMEM copy).
            pl.BlockSpec((tile, d),
                         lambda p, j: (j * (1 - p) + (nt - 1) * p, 0)),
            const((1, d)),        # gamma
            const((1, d)),        # beta
            const((h_dim, d)),    # W1 (torch layout [out, in])
            const((1, h_dim)),    # b1
            const((d, h_dim)),    # W2 (torch layout [out, in])
            const((1, d)),        # b2
        ],
        # Output only materializes during phase 1.
        out_specs=pl.BlockSpec((tile, d), lambda p, j: (j * p, 0)),
        scratch_shapes=[
            pltpu.VMEM((nt, tile, d), x.dtype),     # staged copy of x
            pltpu.VMEM((1, d), jnp.float32),        # x0 (variance anchor)
            pltpu.VMEM((1, d), jnp.float32),        # shifted sum
            pltpu.VMEM((1, d), jnp.float32),        # shifted sum of squares
            pltpu.VMEM((h_dim, d), jnp.float32),    # W1 with BN folded in
            pltpu.VMEM((1, h_dim), jnp.float32),    # b1 with BN folded in
        ],
        compiler_params=pltpu.CompilerParams(
            # Phase/tile axes carry the stats->apply dependency; the kernel is
            # HBM-bound, so a megacore split would not help (shared HBM BW).
            dimension_semantics=("arbitrary", "arbitrary"),
            vmem_limit_bytes=VMEM_LIMIT_BYTES),
        cost_estimate=cost,
    )(x_p, row(gamma), row(beta), w1.astype(matmul_dtype), row(b1),
      w2.astype(matmul_dtype), row(b2))
    return out[:n] if n_pad != n else out


# ---------------------------------------------------------------------------
# Streaming fallback (x too large to stage in VMEM): two pallas_calls.
# ---------------------------------------------------------------------------
def _bn_stats_kernel(x_ref, x0_ref, s1_ref, s2_ref, s1_sc, s2_sc):
    j = pl.program_id(0)

    @pl.when(j == 0)
    def _():
        s1_sc[...] = jnp.zeros_like(s1_sc)
        s2_sc[...] = jnp.zeros_like(s2_sc)

    d0 = x_ref[...].astype(jnp.float32) - x0_ref[...]
    s1_sc[...] += jnp.sum(d0, axis=0, keepdims=True)
    s2_sc[...] += jnp.sum(d0 * d0, axis=0, keepdims=True)

    @pl.when(j == pl.num_programs(0) - 1)
    def _():
        s1_ref[...] = s1_sc[...]
        s2_ref[...] = s2_sc[...]


def _apply_kernel(x_ref, w1f_ref, b1f_ref, w2_ref, b2_ref, o_ref, *,
                  matmul_dtype):
    o_ref[...] = _ff_tile(x_ref[...], w1f_ref[...], b1f_ref[...], w2_ref[...],
                          b2_ref[...], matmul_dtype).astype(o_ref.dtype)


def _mlp_branch_streaming(x, gamma, beta, w1, b1, w2, b2, *, tile, n_pad,
                          matmul_dtype):
    n, d = x.shape
    h_dim = w1.shape[0]
    nt = n_pad // tile
    x_p = jnp.pad(x, ((0, n_pad - n), (0, 0))) if n_pad != n else x
    x0 = x_p[0:1, :].astype(jnp.float32)

    const1 = lambda shape: pl.BlockSpec(shape, lambda j: (0, 0))

    # Pass 1: shifted batch statistics (one HBM read of x).
    s1, s2 = pl.pallas_call(
        _bn_stats_kernel,
        out_shape=(jax.ShapeDtypeStruct((1, d), jnp.float32),
                   jax.ShapeDtypeStruct((1, d), jnp.float32)),
        grid=(nt,),
        in_specs=[pl.BlockSpec((tile, d), lambda j: (j, 0)), const1((1, d))],
        out_specs=(const1((1, d)), const1((1, d))),
        scratch_shapes=[pltpu.VMEM((1, d), jnp.float32),
                        pltpu.VMEM((1, d), jnp.float32)],
        compiler_params=pltpu.CompilerParams(
            dimension_semantics=("arbitrary",),
            vmem_limit_bytes=VMEM_LIMIT_BYTES),
    )(x_p, x0)

    # Finish stats (remove zero-padded rows analytically) and fold BN into W1.
    pad_rows = float(n_pad - n)
    s1 = s1 + pad_rows * x0
    s2 = s2 - pad_rows * (x0 * x0)
    inv_n = 1.0 / n
    mean = x0 + s1 * inv_n
    var = jnp.maximum(s2 * inv_n - (s1 * inv_n) ** 2, 0.0)
    rstd = jax.lax.rsqrt(var + EPS)
    scale = gamma.reshape(1, -1) * rstd
    shift = beta.reshape(1, -1) - mean * scale
    w1f = (w1 * scale).astype(matmul_dtype)                           # [H, D]
    b1f = (b1.reshape(1, -1) + shift @ w1.T).astype(jnp.float32)      # [1, H]

    cost = pl.CostEstimate(
        flops=4 * n_pad * d * h_dim, transcendentals=0,
        bytes_accessed=2 * n_pad * d * x.dtype.itemsize
        + 2 * d * h_dim * jnp.dtype(matmul_dtype).itemsize + 4 * (h_dim + d))

    # Pass 2: folded BN + MLP + residual; row axis megacore-shardable.
    out = pl.pallas_call(
        functools.partial(_apply_kernel, matmul_dtype=matmul_dtype),
        out_shape=jax.ShapeDtypeStruct((n_pad, d), x.dtype),
        grid=(nt,),
        in_specs=[
            pl.BlockSpec((tile, d), lambda j: (j, 0)),
            const1((h_dim, d)),   # W1'
            const1((1, h_dim)),   # b1'
            const1((d, h_dim)),   # W2
            const1((1, d)),       # b2
        ],
        out_specs=pl.BlockSpec((tile, d), lambda j: (j, 0)),
        compiler_params=pltpu.CompilerParams(
            dimension_semantics=("parallel",),
            vmem_limit_bytes=VMEM_LIMIT_BYTES),
        cost_estimate=cost,
    )(x_p, w1f, b1f, w2.astype(matmul_dtype),
      b2.reshape(1, -1).astype(jnp.float32))
    return out[:n] if n_pad != n else out


# ---------------------------------------------------------------------------
# Public entry points.
# ---------------------------------------------------------------------------
def mlp_branch(x, gamma, beta, w1, b1, w2, b2, *, tile_n=DEFAULT_TILE_N,
               matmul_dtype=jnp.bfloat16, fused_stage_bytes=FUSED_STAGE_BYTES):
    """One stream (h or e): BatchNorm1d -> Linear/ReLU/Dropout(0)/Linear -> +x.

    x: [N, D] row-major, as in the PyTorch module.  Params in PyTorch shapes:
    gamma/beta [D], W1 [H, D], b1 [H], W2 [D, H], b2 [D].
    """
    n, d = x.shape
    tile = _round_up(min(tile_n, _round_up(n, 128)), 128)
    n_pad = _round_up(n, tile)
    # The staged copy is lane-padded to 128 in VMEM, hence round_up(d, 128).
    stage_bytes = n_pad * _round_up(d, 128) * x.dtype.itemsize
    kw = dict(tile=tile, n_pad=n_pad, matmul_dtype=matmul_dtype)
    if stage_bytes <= fused_stage_bytes:
        return _mlp_branch_fused(x, gamma, beta, w1, b1, w2, b2, **kw)
    # TODO(synk): for very large N on v7x, also split the stats pass across the
    # two TensorCores (leading CORE_PARALLEL axis with per-core partial sums).
    return _mlp_branch_streaming(x, gamma, beta, w1, b1, w2, b2, **kw)


def mlp_layer_forward(h, e, params, *, tile_n=DEFAULT_TILE_N,
                      matmul_dtype=jnp.bfloat16,
                      fused_stage_bytes=FUSED_STAGE_BYTES):
    """MLPLayer.forward(g, h, e) with dropout=0.0, batch_norm=True and
    residual=True (valid since input_dim == output_dim).  `g` is unused.
    TODO(synk): BatchNorm running-mean/var buffer updates (a training-time side
    effect, not part of the returned forward value) are not implemented."""
    kw = dict(tile_n=tile_n, matmul_dtype=matmul_dtype,
              fused_stage_bytes=fused_stage_bytes)
    h_out = mlp_branch(h, *params["h"], **kw)
    e_out = mlp_branch(e, *params["e"], **kw)
    return h_out, e_out


def init_params(key, output_dim, hidden_dim):
    """PyTorch-shaped parameters (Linear weight [out, in], uniform fan-in)."""
    def linear(k, fan_in, fan_out):
        k1, k2 = jax.random.split(k)
        bound = 1.0 / (fan_in ** 0.5)
        w = jax.random.uniform(k1, (fan_out, fan_in), jnp.float32, -bound, bound)
        b = jax.random.uniform(k2, (fan_out,), jnp.float32, -bound, bound)
        return w, b

    def branch(k):
        k1, k2 = jax.random.split(k)
        w1, b1 = linear(k1, output_dim, hidden_dim)
        w2, b2 = linear(k2, hidden_dim, output_dim)
        gamma = jnp.ones((output_dim,), jnp.float32)   # BatchNorm1d weight
        beta = jnp.zeros((output_dim,), jnp.float32)   # BatchNorm1d bias
        return (gamma, beta, w1, b1, w2, b2)

    kh, ke = jax.random.split(key)
    return {"h": branch(kh), "e": branch(ke)}


def ref_branch(x, gamma, beta, w1, b1, w2, b2):
    """Pure-JAX f32 reference of the PyTorch forward (train-mode BN)."""
    m = jnp.mean(x, axis=0, keepdims=True)
    v = jnp.mean((x - m) ** 2, axis=0, keepdims=True)
    xn = (x - m) / jnp.sqrt(v + EPS) * gamma + beta
    y = jnp.maximum(xn @ w1.T + b1, 0.0) @ w2.T + b2
    return x + y


if __name__ == "__main__":
    # Small shapes consistent with the module: input_dim == output_dim == 32.
    output_dim, hidden_dim = 32, 64
    n_nodes, n_edges = 8, 16

    key = jax.random.PRNGKey(0)
    k_h, k_e, k_p = jax.random.split(key, 3)
    h = jax.random.normal(k_h, (n_nodes, output_dim), jnp.float32)
    e = jax.random.normal(k_e, (n_edges, output_dim), jnp.float32)
    params = init_params(k_p, output_dim, hidden_dim)

    h_ref = ref_branch(h, *params["h"])
    e_ref = ref_branch(e, *params["e"])

    # Fused single-kernel path (default): bf16 MXU operands, f32 BN/residual.
    fwd = jax.jit(mlp_layer_forward)
    h_out, e_out = fwd(h, e, params)
    jax.block_until_ready((h_out, e_out))
    assert h_out.shape == h.shape and e_out.shape == e.shape
    assert jnp.allclose(h_out, h_ref, atol=5e-2, rtol=5e-2)
    assert jnp.allclose(e_out, e_ref, atol=5e-2, rtol=5e-2)

    # Fused path with full-f32 matmuls matches the PyTorch f32 math tightly.
    fwd_f32 = jax.jit(functools.partial(mlp_layer_forward,
                                        matmul_dtype=jnp.float32))
    h32, e32 = fwd_f32(h, e, params)
    jax.block_until_ready((h32, e32))
    assert jnp.allclose(h32, h_ref, atol=1e-4, rtol=1e-4)
    assert jnp.allclose(e32, e_ref, atol=1e-4, rtol=1e-4)

    # Streaming two-pass fallback (forced) — the path taken for very large N.
    fwd_stream = jax.jit(functools.partial(mlp_layer_forward,
                                           matmul_dtype=jnp.float32,
                                           fused_stage_bytes=0))
    hs, es = fwd_stream(h, e, params)
    jax.block_until_ready((hs, es))
    assert jnp.allclose(hs, h_ref, atol=1e-4, rtol=1e-4)
    assert jnp.allclose(es, e_ref, atol=1e-4, rtol=1e-4)

    print("KERNEL_OK")
</pallas_src>

<mosaic_0001>
module attributes {stable_mosaic.version = 11 : i64} {
  func.func @_fused_mlp_kernel(%arg0: i32, %arg1: i32, %arg2: memref<128x32xf32, #tpu.memory_space<vmem>>, %arg3: memref<1x32xf32, #tpu.memory_space<vmem>>, %arg4: memref<1x32xf32, #tpu.memory_space<vmem>>, %arg5: memref<64x32xbf16, #tpu.memory_space<vmem>>, %arg6: memref<1x64xf32, #tpu.memory_space<vmem>>, %arg7: memref<32x64xbf16, #tpu.memory_space<vmem>>, %arg8: memref<1x32xf32, #tpu.memory_space<vmem>>, %arg9: memref<128x32xf32, #tpu.memory_space<vmem>>, %arg10: memref<1x128x32xf32, #tpu.memory_space<vmem>>, %arg11: memref<1x32xf32, #tpu.memory_space<vmem>>, %arg12: memref<1x32xf32, #tpu.memory_space<vmem>>, %arg13: memref<1x32xf32, #tpu.memory_space<vmem>>, %arg14: memref<64x32xf32, #tpu.memory_space<vmem>>, %arg15: memref<1x64xf32, #tpu.memory_space<vmem>>) attributes {dimension_semantics = [#tpu.dimension_semantics<arbitrary>, #tpu.dimension_semantics<arbitrary>], iteration_bounds = array<i64: 2, 1>, scalar_prefetch = 0 : i64, scratch_operands = 6 : i64, tpu.core_type = #tpu.core_type<tc>, window_params = [{transform_indices = @transform_0, window_bounds = array<i64: 128, 32>}, {pipeline_mode = #tpu.pipeline_mode<synchronous>, transform_indices = @transform_1, window_bounds = array<i64: 1, 32>}, {pipeline_mode = #tpu.pipeline_mode<synchronous>, transform_indices = @transform_2, window_bounds = array<i64: 1, 32>}, {pipeline_mode = #tpu.pipeline_mode<synchronous>, transform_indices = @transform_3, window_bounds = array<i64: 64, 32>}, {pipeline_mode = #tpu.pipeline_mode<synchronous>, transform_indices = @transform_4, window_bounds = array<i64: 1, 64>}, {pipeline_mode = #tpu.pipeline_mode<synchronous>, transform_indices = @transform_5, window_bounds = array<i64: 32, 64>}, {pipeline_mode = #tpu.pipeline_mode<synchronous>, transform_indices = @transform_6, window_bounds = array<i64: 1, 32>}, {transform_indices = @transform_7, window_bounds = array<i64: 128, 32>}]} {
    %c0_i32 = arith.constant 0 : i32
    %0 = arith.cmpi eq, %arg0, %c0_i32 : i32
    %1 = arith.extui %0 : i1 to i32
    %c0_i32_0 = arith.constant 0 : i32
    %2 = arith.cmpi ne, %1, %c0_i32_0 : i32
    scf.if %2 {
      %c0 = arith.constant 0 : index
      %c0_2 = arith.constant 0 : index
      %6 = vector.load %arg2[%c0, %c0_2] : memref<128x32xf32, #tpu.memory_space<vmem>>, vector<128x32xf32>
      %c0_i32_3 = arith.constant 0 : i32
      %7 = arith.cmpi eq, %arg1, %c0_i32_3 : i32
      %8 = arith.extui %7 : i1 to i32
      %c0_i32_4 = arith.constant 0 : i32
      %9 = arith.cmpi ne, %8, %c0_i32_4 : i32
      scf.if %9 {
        %31 = vector.extract_strided_slice %6 {offsets = [0, 0], sizes = [1, 32], strides = [1, 1]} : vector<128x32xf32> to vector<1x32xf32>
        %c0_20 = arith.constant 0 : index
        %c0_21 = arith.constant 0 : index
        %32 = vector.load %arg11[%c0_20, %c0_21] : memref<1x32xf32, #tpu.memory_space<vmem>>, vector<1x32xf32>
        tpu.vector_store %arg11[%c0_20, %c0_21], %31 {strides = array<i32>} : memref<1x32xf32, #tpu.memory_space<vmem>>, vector<1x32xf32>,
        %cst_22 = arith.constant 0.000000e+00 : f32
        %33 = vector.broadcast %cst_22 : f32 to vector<1x32xf32>
        %c0_23 = arith.constant 0 : index
        %c0_24 = arith.constant 0 : index
        %34 = vector.load %arg12[%c0_23, %c0_24] : memref<1x32xf32, #tpu.memory_space<vmem>>, vector<1x32xf32>
        tpu.vector_store %arg12[%c0_23, %c0_24], %33 {strides = array<i32>} : memref<1x32xf32, #tpu.memory_space<vmem>>, vector<1x32xf32>,
        %cst_25 = arith.constant 0.000000e+00 : f32
        %35 = vector.broadcast %cst_25 : f32 to vector<1x32xf32>
        %c0_26 = arith.constant 0 : index
        %c0_27 = arith.constant 0 : index
        %36 = vector.load %arg13[%c0_26, %c0_27] : memref<1x32xf32, #tpu.memory_space<vmem>>, vector<1x32xf32>
        tpu.vector_store %arg13[%c0_26, %c0_27], %35 {strides = array<i32>} : memref<1x32xf32, #tpu.memory_space<vmem>>, vector<1x32xf32>,
      } else {
      }
      %10 = arith.index_cast %arg1 : i32 to index
      %c0_5 = arith.constant 0 : index
      %c0_6 = arith.constant 0 : index
      %11 = vector.load %arg10[%10, %c0_5, %c0_6] : memref<1x128x32xf32, #tpu.memory_space<vmem>>, vector<1x128x32xf32>
      %12 = vector.shape_cast %11 : vector<1x128x32xf32> to vector<128x32xf32>
      %13 = vector.shape_cast %6 : vector<128x32xf32> to vector<1x128x32xf32>
      tpu.vector_store %arg10[%10, %c0_5, %c0_6], %13 {strides = array<i32>} : memref<1x128x32xf32, #tpu.memory_space<vmem>>, vector<1x128x32xf32>,
      %c0_7 = arith.constant 0 : index
      %c0_8 = arith.constant 0 : index
      %14 = vector.load %arg11[%c0_7, %c0_8] : memref<1x32xf32, #tpu.memory_space<vmem>>, vector<1x32xf32>
      %15 = vector.broadcast %14 : vector<1x32xf32> to vector<128x32xf32>
      %16 = arith.subf %6, %15 : vector<128x32xf32>
      %c0_9 = arith.constant 0 : index
      %c0_10 = arith.constant 0 : index
      %17 = vector.load %arg12[%c0_9, %c0_10] : memref<1x32xf32, #tpu.memory_space<vmem>>, vector<1x32xf32>
      %cst = arith.constant dense<0.000000e+00> : vector<32xf32>
      %18 = vector.multi_reduction <add>, %16, %cst [0] : vector<128x32xf32> to vector<32xf32>
      %19 = vector.shape_cast %18 : vector<32xf32> to vector<1x32xf32>
      %20 = arith.addf %17, %19 : vector<1x32xf32>
      %c0_11 = arith.constant 0 : index
      %c0_12 = arith.constant 0 : index
      %21 = vector.load %arg12[%c0_11, %c0_12] : memref<1x32xf32, #tpu.memory_space<vmem>>, vector<1x32xf32>
      tpu.vector_store %arg12[%c0_11, %c0_12], %20 {strides = array<i32>} : memref<1x32xf32, #tpu.memory_space<vmem>>, vector<1x32xf32>,
      %c0_13 = arith.constant 0 : index
      %c0_14 = arith.constant 0 : index
      %22 = vector.load %arg13[%c0_13, %c0_14] : memref<1x32xf32, #tpu.memory_space<vmem>>, vector<1x32xf32>
      %23 = arith.mulf %16, %16 : vector<128x32xf32>
      %cst_15 = arith.constant dense<0.000000e+00> : vector<32xf32>
      %24 = vector.multi_reduction <add>, %23, %cst_15 [0] : vector<128x32xf32> to vector<32xf32>
      %25 = vector.shape_cast %24 : vector<32xf32> to vector<1x32xf32>
      %26 = arith.addf %22, %25 : vector<1x32xf32>
      %c0_16 = arith.constant 0 : index
      %c0_17 = arith.constant 0 : index
      %27 = vector.load %arg13[%c0_16, %c0_17] : memref<1x32xf32, #tpu.memory_space<vmem>>, vector<1x32xf32>
      tpu.vector_store %arg13[%c0_16, %c0_17], %26 {strides = array<i32>} : memref<1x32xf32, #tpu.memory_space<vmem>>, vector<1x32xf32>,
      %c0_i32_18 = arith.constant 0 : i32
      %28 = arith.cmpi eq, %arg1, %c0_i32_18 : i32
      %29 = arith.extui %28 : i1 to i32
      %c0_i32_19 = arith.constant 0 : i32
      %30 = arith.cmpi ne, %29, %c0_i32_19 : i32
      scf.if %30 {
        %c0_20 = arith.constant 0 : index
        %c0_21 = arith.constant 0 : index
        %31 = vector.load %arg11[%c0_20, %c0_21] : memref<1x32xf32, #tpu.memory_space<vmem>>, vector<1x32xf32>
        %c0_22 = arith.constant 0 : index
        %c0_23 = arith.constant 0 : index
        %32 = vector.load %arg12[%c0_22, %c0_23] : memref<1x32xf32, #tpu.memory_space<vmem>>, vector<1x32xf32>
        %cst_24 = arith.constant 1.200000e+02 : f32
        %33 = vector.broadcast %cst_24 : f32 to vector<1x32xf32>
        %34 = arith.mulf %33, %31 : vector<1x32xf32>
        %35 = arith.addf %32, %34 : vector<1x32xf32>
        %c0_25 = arith.constant 0 : index
        %c0_26 = arith.constant 0 : index
        %36 = vector.load %arg13[%c0_25, %c0_26] : memref<1x32xf32, #tpu.memory_space<vmem>>, vector<1x32xf32>
        %37 = arith.mulf %31, %31 : vector<1x32xf32>
        %cst_27 = arith.constant 1.200000e+02 : f32
        %38 = vector.broadcast %cst_27 : f32 to vector<1x32xf32>
        %39 = arith.mulf %38, %37 : vector<1x32xf32>
        %40 = arith.subf %36, %39 : vector<1x32xf32>
        %cst_28 = arith.constant 1.250000e-01 : f32
        %41 = vector.broadcast %cst_28 : f32 to vector<1x32xf32>
        %42 = arith.mulf %35, %41 : vector<1x32xf32>
        %43 = arith.addf %31, %42 : vector<1x32xf32>
        %cst_29 = arith.constant 1.250000e-01 : f32
        %44 = vector.broadcast %cst_29 : f32 to vector<1x32xf32>
        %45 = arith.mulf %40, %44 : vector<1x32xf32>
        %cst_30 = arith.constant 1.250000e-01 : f32
        %46 = vector.broadcast %cst_30 : f32 to vector<1x32xf32>
        %47 = arith.mulf %35, %46 : vector<1x32xf32>
        %48 = arith.mulf %47, %47 : vector<1x32xf32>
        %49 = arith.subf %45, %48 : vector<1x32xf32>
        %cst_31 = arith.constant 0.000000e+00 : f32
        %50 = vector.broadcast %cst_31 : f32 to vector<1x32xf32>
        %51 = arith.maximumf %49, %50 : vector<1x32xf32>
        %cst_32 = arith.constant 9.99999974E-6 : f32
        %52 = vector.broadcast %cst_32 : f32 to vector<1x32xf32>
        %53 = arith.addf %51, %52 : vector<1x32xf32>
        %54 = math.rsqrt %53 : vector<1x32xf32>
        %c0_33 = arith.constant 0 : index
        %c0_34 = arith.constant 0 : index
        %55 = vector.load %arg3[%c0_33, %c0_34] : memref<1x32xf32, #tpu.memory_space<vmem>>, vector<1x32xf32>
        %56 = arith.mulf %55, %54 : vector<1x32xf32>
        %c0_35 = arith.constant 0 : index
        %c0_36 = arith.constant 0 : index
        %57 = vector.load %arg4[%c0_35, %c0_36] : memref<1x32xf32, #tpu.memory_space<vmem>>, vector<1x32xf32>
        %58 = arith.mulf %43, %56 : vector<1x32xf32>
        %59 = arith.subf %57, %58 : vector<1x32xf32>
        %c0_37 = arith.constant 0 : index
        %c0_38 = arith.constant 0 : index
        %60 = vector.load %arg5[%c0_37, %c0_38] : memref<64x32xbf16, #tpu.memory_space<vmem>>, vector<64x32xbf16>
        %61 = arith.extf %60 : vector<64x32xbf16> to vector<64x32xf32>
        %62 = vector.broadcast %56 : vector<1x32xf32> to vector<64x32xf32>
        %63 = arith.mulf %61, %62 : vector<64x32xf32>
        %c0_39 = arith.constant 0 : index
        %c0_40 = arith.constant 0 : index
        %64 = vector.load %arg14[%c0_39, %c0_40] : memref<64x32xf32, #tpu.memory_space<vmem>>, vector<64x32xf32>
        tpu.vector_store %arg14[%c0_39, %c0_40], %63 {strides = array<i32>} : memref<64x32xf32, #tpu.memory_space<vmem>>, vector<64x32xf32>,
        %65 = vector.shape_cast %59 : vector<1x32xf32> to vector<1x32xf32>
        %66 = vector.broadcast %65 : vector<1x32xf32> to vector<8x32xf32>
        %c0_41 = arith.constant 0 : index
        %c0_42 = arith.constant 0 : index
        %67 = vector.load %arg6[%c0_41, %c0_42] : memref<1x64xf32, #tpu.memory_space<vmem>>, vector<1x64xf32>
        %cst_43 = arith.constant dense<0.000000e+00> : vector<8x64xf32>
        %68 = tpu.matmul %66, %61, %cst_43 {dimension_numbers = #tpu.dot_dimension_numbers<[1], [1], [0], [0], [0, 0, 1, 0], [], []>} : vector<8x32xf32>, vector<64x32xf32>, vector<8x64xf32> -> vector<8x64xf32>
        %69 = vector.extract_strided_slice %68 {offsets = [0, 0], sizes = [1, 64], strides = [1, 1]} : vector<8x64xf32> to vector<1x64xf32>
        %70 = arith.addf %67, %69 : vector<1x64xf32>
        %c0_44 = arith.constant 0 : index
        %c0_45 = arith.constant 0 : index
        %71 = vector.load %arg15[%c0_44, %c0_45] : memref<1x64xf32, #tpu.memory_space<vmem>>, vector<1x64xf32>
        tpu.vector_store %arg15[%c0_44, %c0_45], %70 {strides = array<i32>} : memref<1x64xf32, #tpu.memory_space<vmem>>, vector<1x64xf32>,
      } else {
      }
    } else {
    }
    %c1_i32 = arith.constant 1 : i32
    %3 = arith.cmpi eq, %arg0, %c1_i32 : i32
    %4 = arith.extui %3 : i1 to i32
    %c0_i32_1 = arith.constant 0 : i32
    %5 = arith.cmpi ne, %4, %c0_i32_1 : i32
    scf.if %5 {
      %6 = arith.index_cast %arg1 : i32 to index
      %c0 = arith.constant 0 : index
      %c0_2 = arith.constant 0 : index
      %7 = vector.load %arg10[%6, %c0, %c0_2] : memref<1x128x32xf32, #tpu.memory_space<vmem>>, vector<1x128x32xf32>
      %8 = vector.shape_cast %7 : vector<1x128x32xf32> to vector<128x32xf32>
      %c0_3 = arith.constant 0 : index
      %c0_4 = arith.constant 0 : index
      %9 = vector.load %arg14[%c0_3, %c0_4] : memref<64x32xf32, #tpu.memory_space<vmem>>, vector<64x32xf32>
      %c0_5 = arith.constant 0 : index
      %c0_6 = arith.constant 0 : index
      %10 = vector.load %arg15[%c0_5, %c0_6] : memref<1x64xf32, #tpu.memory_space<vmem>>, vector<1x64xf32>
      %c0_7 = arith.constant 0 : index
      %c0_8 = arith.constant 0 : index
      %11 = vector.load %arg7[%c0_7, %c0_8] : memref<32x64xbf16, #tpu.memory_space<vmem>>, vector<32x64xbf16>
      %c0_9 = arith.constant 0 : index
      %c0_10 = arith.constant 0 : index
      %12 = vector.load %arg8[%c0_9, %c0_10] : memref<1x32xf32, #tpu.memory_space<vmem>>, vector<1x32xf32>
      %13 = arith.truncf %8 : vector<128x32xf32> to vector<128x32xbf16>
      %14 = arith.truncf %9 : vector<64x32xf32> to vector<64x32xbf16>
      %cst = arith.constant dense<0.000000e+00> : vector<128x64xf32>
      %15 = tpu.matmul %13, %14, %cst {dimension_numbers = #tpu.dot_dimension_numbers<[1], [1], [0], [0], [0, 0, 1, 0], [], []>} : vector<128x32xbf16>, vector<64x32xbf16>, vector<128x64xf32> -> vector<128x64xf32>
      %16 = vector.broadcast %10 : vector<1x64xf32> to vector<128x64xf32>
      %17 = arith.addf %15, %16 : vector<128x64xf32>
      %cst_11 = arith.constant 0.000000e+00 : f32
      %18 = vector.broadcast %cst_11 : f32 to vector<128x64xf32>
      %19 = arith.maximumf %17, %18 : vector<128x64xf32>
      %20 = arith.truncf %19 : vector<128x64xf32> to vector<128x64xbf16>
      %cst_12 = arith.constant dense<0.000000e+00> : vector<128x32xf32>
      %21 = tpu.matmul %20, %11, %cst_12 {dimension_numbers = #tpu.dot_dimension_numbers<[1], [1], [0], [0], [0, 0, 1, 0], [], []>} : vector<128x64xbf16>, vector<32x64xbf16>, vector<128x32xf32> -> vector<128x32xf32>
      %22 = vector.broadcast %12 : vector<1x32xf32> to vector<128x32xf32>
      %23 = arith.addf %21, %22 : vector<128x32xf32>
      %24 = arith.addf %23, %8 : vector<128x32xf32>
      %c0_13 = arith.constant 0 : index
      %c0_14 = arith.constant 0 : index
      %25 = vector.load %arg9[%c0_13, %c0_14] : memref<128x32xf32, #tpu.memory_space<vmem>>, vector<128x32xf32>
      tpu.vector_store %arg9[%c0_13, %c0_14], %24 {strides = array<i32>} : memref<128x32xf32, #tpu.memory_space<vmem>>, vector<128x32xf32>,
    } else {
    }
    return
  }
  func.func @transform_0(%arg0: i32, %arg1: i32) -> (i32, i32) {
    %c1_i32 = arith.constant 1 : i32
    %0 = arith.subi %c1_i32, %arg0 : i32
    %1 = arith.muli %arg1, %0 : i32
    %c0_i32 = arith.constant 0 : i32
    %2 = arith.muli %c0_i32, %arg0 : i32
    %3 = arith.addi %1, %2 : i32
    %c0_i32_0 = arith.constant 0 : i32
    %c0_i32_1 = arith.constant 0 : i32
    return %3, %c0_i32_0 : i32, i32
  }
  func.func @transform_1(%arg0: i32, %arg1: i32) -> (i32, i32) {
    %c0_i32 = arith.constant 0 : i32
    %c0_i32_0 = arith.constant 0 : i32
    %c0_i32_1 = arith.constant 0 : i32
    return %c0_i32, %c0_i32_0 : i32, i32
  }
  func.func @transform_2(%arg0: i32, %arg1: i32) -> (i32, i32) {
    %c0_i32 = arith.constant 0 : i32
    %c0_i32_0 = arith.constant 0 : i32
    %c0_i32_1 = arith.constant 0 : i32
    return %c0_i32, %c0_i32_0 : i32, i32
  }
  func.func @transform_3(%arg0: i32, %arg1: i32) -> (i32, i32) {
    %c0_i32 = arith.constant 0 : i32
    %c0_i32_0 = arith.constant 0 : i32
    %c0_i32_1 = arith.constant 0 : i32
    return %c0_i32, %c0_i32_0 : i32, i32
  }
  func.func @transform_4(%arg0: i32, %arg1: i32) -> (i32, i32) {
    %c0_i32 = arith.constant 0 : i32
    %c0_i32_0 = arith.constant 0 : i32
    %c0_i32_1 = arith.constant 0 : i32
    return %c0_i32, %c0_i32_0 : i32, i32
  }
  func.func @transform_5(%arg0: i32, %arg1: i32) -> (i32, i32) {
    %c0_i32 = arith.constant 0 : i32
    %c0_i32_0 = arith.constant 0 : i32
    %c0_i32_1 = arith.constant 0 : i32
    return %c0_i32, %c0_i32_0 : i32, i32
  }
  func.func @transform_6(%arg0: i32, %arg1: i32) -> (i32, i32) {
    %c0_i32 = arith.constant 0 : i32
    %c0_i32_0 = arith.constant 0 : i32
    %c0_i32_1 = arith.constant 0 : i32
    return %c0_i32, %c0_i32_0 : i32, i32
  }
  func.func @transform_7(%arg0: i32, %arg1: i32) -> (i32, i32) {
    %0 = arith.muli %arg1, %arg0 : i32
    %c0_i32 = arith.constant 0 : i32
    %c0_i32_0 = arith.constant 0 : i32
    return %0, %c0_i32 : i32, i32
  }
}

module attributes {stable_mosaic.version = 11 : i64} {
  func.func @_fused_mlp_kernel(%arg0: i32, %arg1: i32, %arg2: memref<128x32xf32, #tpu.memory_space<vmem>>, %arg3: memref<1x32xf32, #tpu.memory_space<vmem>>, %arg4: memref<1x32xf32, #tpu.memory_space<vmem>>, %arg5: memref<64x32xbf16, #tpu.memory_space<vmem>>, %arg6: memref<1x64xf32, #tpu.memory_space<vmem>>, %arg7: memref<32x64xbf16, #tpu.memory_space<vmem>>, %arg8: memref<1x32xf32, #tpu.memory_space<vmem>>, %arg9: memref<128x32xf32, #tpu.memory_space<vmem>>, %arg10: memref<1x128x32xf32, #tpu.memory_space<vmem>>, %arg11: memref<1x32xf32, #tpu.memory_space<vmem>>, %arg12: memref<1x32xf32, #tpu.memory_space<vmem>>, %arg13: memref<1x32xf32, #tpu.memory_space<vmem>>, %arg14: memref<64x32xf32, #tpu.memory_space<vmem>>, %arg15: memref<1x64xf32, #tpu.memory_space<vmem>>) attributes {dimension_semantics = [#tpu.dimension_semantics<arbitrary>, #tpu.dimension_semantics<arbitrary>], iteration_bounds = array<i64: 2, 1>, scalar_prefetch = 0 : i64, scratch_operands = 6 : i64, tpu.core_type = #tpu.core_type<tc>, window_params = [{transform_indices = @transform_0, window_bounds = array<i64: 128, 32>}, {pipeline_mode = #tpu.pipeline_mode<synchronous>, transform_indices = @transform_1, window_bounds = array<i64: 1, 32>}, {pipeline_mode = #tpu.pipeline_mode<synchronous>, transform_indices = @transform_2, window_bounds = array<i64: 1, 32>}, {pipeline_mode = #tpu.pipeline_mode<synchronous>, transform_indices = @transform_3, window_bounds = array<i64: 64, 32>}, {pipeline_mode = #tpu.pipeline_mode<synchronous>, transform_indices = @transform_4, window_bounds = array<i64: 1, 64>}, {pipeline_mode = #tpu.pipeline_mode<synchronous>, transform_indices = @transform_5, window_bounds = array<i64: 32, 64>}, {pipeline_mode = #tpu.pipeline_mode<synchronous>, transform_indices = @transform_6, window_bounds = array<i64: 1, 32>}, {transform_indices = @transform_7, window_bounds = array<i64: 128, 32>}]} {
    %c0_i32 = arith.constant 0 : i32
    %0 = arith.cmpi eq, %arg0, %c0_i32 : i32
    %1 = arith.extui %0 : i1 to i32
    %c0_i32_0 = arith.constant 0 : i32
    %2 = arith.cmpi ne, %1, %c0_i32_0 : i32
    scf.if %2 {
      %c0 = arith.constant 0 : index
      %c0_2 = arith.constant 0 : index
      %6 = vector.load %arg2[%c0, %c0_2] : memref<128x32xf32, #tpu.memory_space<vmem>>, vector<128x32xf32>
      %c0_i32_3 = arith.constant 0 : i32
      %7 = arith.cmpi eq, %arg1, %c0_i32_3 : i32
      %8 = arith.extui %7 : i1 to i32
      %c0_i32_4 = arith.constant 0 : i32
      %9 = arith.cmpi ne, %8, %c0_i32_4 : i32
      scf.if %9 {
        %31 = vector.extract_strided_slice %6 {offsets = [0, 0], sizes = [1, 32], strides = [1, 1]} : vector<128x32xf32> to vector<1x32xf32>
        %c0_20 = arith.constant 0 : index
        %c0_21 = arith.constant 0 : index
        %32 = vector.load %arg11[%c0_20, %c0_21] : memref<1x32xf32, #tpu.memory_space<vmem>>, vector<1x32xf32>
        tpu.vector_store %arg11[%c0_20, %c0_21], %31 {strides = array<i32>} : memref<1x32xf32, #tpu.memory_space<vmem>>, vector<1x32xf32>,
        %cst_22 = arith.constant 0.000000e+00 : f32
        %33 = vector.broadcast %cst_22 : f32 to vector<1x32xf32>
        %c0_23 = arith.constant 0 : index
        %c0_24 = arith.constant 0 : index
        %34 = vector.load %arg12[%c0_23, %c0_24] : memref<1x32xf32, #tpu.memory_space<vmem>>, vector<1x32xf32>
        tpu.vector_store %arg12[%c0_23, %c0_24], %33 {strides = array<i32>} : memref<1x32xf32, #tpu.memory_space<vmem>>, vector<1x32xf32>,
        %cst_25 = arith.constant 0.000000e+00 : f32
        %35 = vector.broadcast %cst_25 : f32 to vector<1x32xf32>
        %c0_26 = arith.constant 0 : index
        %c0_27 = arith.constant 0 : index
        %36 = vector.load %arg13[%c0_26, %c0_27] : memref<1x32xf32, #tpu.memory_space<vmem>>, vector<1x32xf32>
        tpu.vector_store %arg13[%c0_26, %c0_27], %35 {strides = array<i32>} : memref<1x32xf32, #tpu.memory_space<vmem>>, vector<1x32xf32>,
      } else {
      }
      %10 = arith.index_cast %arg1 : i32 to index
      %c0_5 = arith.constant 0 : index
      %c0_6 = arith.constant 0 : index
      %11 = vector.load %arg10[%10, %c0_5, %c0_6] : memref<1x128x32xf32, #tpu.memory_space<vmem>>, vector<1x128x32xf32>
      %12 = vector.shape_cast %11 : vector<1x128x32xf32> to vector<128x32xf32>
      %13 = vector.shape_cast %6 : vector<128x32xf32> to vector<1x128x32xf32>
      tpu.vector_store %arg10[%10, %c0_5, %c0_6], %13 {strides = array<i32>} : memref<1x128x32xf32, #tpu.memory_space<vmem>>, vector<1x128x32xf32>,
      %c0_7 = arith.constant 0 : index
      %c0_8 = arith.constant 0 : index
      %14 = vector.load %arg11[%c0_7, %c0_8] : memref<1x32xf32, #tpu.memory_space<vmem>>, vector<1x32xf32>
      %15 = vector.broadcast %14 : vector<1x32xf32> to vector<128x32xf32>
      %16 = arith.subf %6, %15 : vector<128x32xf32>
      %c0_9 = arith.constant 0 : index
      %c0_10 = arith.constant 0 : index
      %17 = vector.load %arg12[%c0_9, %c0_10] : memref<1x32xf32, #tpu.memory_space<vmem>>, vector<1x32xf32>
      %cst = arith.constant dense<0.000000e+00> : vector<32xf32>
      %18 = vector.multi_reduction <add>, %16, %cst [0] : vector<128x32xf32> to vector<32xf32>
      %19 = vector.shape_cast %18 : vector<32xf32> to vector<1x32xf32>
      %20 = arith.addf %17, %19 : vector<1x32xf32>
      %c0_11 = arith.constant 0 : index
      %c0_12 = arith.constant 0 : index
      %21 = vector.load %arg12[%c0_11, %c0_12] : memref<1x32xf32, #tpu.memory_space<vmem>>, vector<1x32xf32>
      tpu.vector_store %arg12[%c0_11, %c0_12], %20 {strides = array<i32>} : memref<1x32xf32, #tpu.memory_space<vmem>>, vector<1x32xf32>,
      %c0_13 = arith.constant 0 : index
      %c0_14 = arith.constant 0 : index
      %22 = vector.load %arg13[%c0_13, %c0_14] : memref<1x32xf32, #tpu.memory_space<vmem>>, vector<1x32xf32>
      %23 = arith.mulf %16, %16 : vector<128x32xf32>
      %cst_15 = arith.constant dense<0.000000e+00> : vector<32xf32>
      %24 = vector.multi_reduction <add>, %23, %cst_15 [0] : vector<128x32xf32> to vector<32xf32>
      %25 = vector.shape_cast %24 : vector<32xf32> to vector<1x32xf32>
      %26 = arith.addf %22, %25 : vector<1x32xf32>
      %c0_16 = arith.constant 0 : index
      %c0_17 = arith.constant 0 : index
      %27 = vector.load %arg13[%c0_16, %c0_17] : memref<1x32xf32, #tpu.memory_space<vmem>>, vector<1x32xf32>
      tpu.vector_store %arg13[%c0_16, %c0_17], %26 {strides = array<i32>} : memref<1x32xf32, #tpu.memory_space<vmem>>, vector<1x32xf32>,
      %c0_i32_18 = arith.constant 0 : i32
      %28 = arith.cmpi eq, %arg1, %c0_i32_18 : i32
      %29 = arith.extui %28 : i1 to i32
      %c0_i32_19 = arith.constant 0 : i32
      %30 = arith.cmpi ne, %29, %c0_i32_19 : i32
      scf.if %30 {
        %c0_20 = arith.constant 0 : index
        %c0_21 = arith.constant 0 : index
        %31 = vector.load %arg11[%c0_20, %c0_21] : memref<1x32xf32, #tpu.memory_space<vmem>>, vector<1x32xf32>
        %c0_22 = arith.constant 0 : index
        %c0_23 = arith.constant 0 : index
        %32 = vector.load %arg12[%c0_22, %c0_23] : memref<1x32xf32, #tpu.memory_space<vmem>>, vector<1x32xf32>
        %cst_24 = arith.constant 1.120000e+02 : f32
        %33 = vector.broadcast %cst_24 : f32 to vector<1x32xf32>
        %34 = arith.mulf %33, %31 : vector<1x32xf32>
        %35 = arith.addf %32, %34 : vector<1x32xf32>
        %c0_25 = arith.constant 0 : index
        %c0_26 = arith.constant 0 : index
        %36 = vector.load %arg13[%c0_25, %c0_26] : memref<1x32xf32, #tpu.memory_space<vmem>>, vector<1x32xf32>
        %37 = arith.mulf %31, %31 : vector<1x32xf32>
        %cst_27 = arith.constant 1.120000e+02 : f32
        %38 = vector.broadcast %cst_27 : f32 to vector<1x32xf32>
        %39 = arith.mulf %38, %37 : vector<1x32xf32>
        %40 = arith.subf %36, %39 : vector<1x32xf32>
        %cst_28 = arith.constant 6.250000e-02 : f32
        %41 = vector.broadcast %cst_28 : f32 to vector<1x32xf32>
        %42 = arith.mulf %35, %41 : vector<1x32xf32>
        %43 = arith.addf %31, %42 : vector<1x32xf32>
        %cst_29 = arith.constant 6.250000e-02 : f32
        %44 = vector.broadcast %cst_29 : f32 to vector<1x32xf32>
        %45 = arith.mulf %40, %44 : vector<1x32xf32>
        %cst_30 = arith.constant 6.250000e-02 : f32
        %46 = vector.broadcast %cst_30 : f32 to vector<1x32xf32>
        %47 = arith.mulf %35, %46 : vector<1x32xf32>
        %48 = arith.mulf %47, %47 : vector<1x32xf32>
        %49 = arith.subf %45, %48 : vector<1x32xf32>
        %cst_31 = arith.constant 0.000000e+00 : f32
        %50 = vector.broadcast %cst_31 : f32 to vector<1x32xf32>
        %51 = arith.maximumf %49, %50 : vector<1x32xf32>
        %cst_32 = arith.constant 9.99999974E-6 : f32
        %52 = vector.broadcast %cst_32 : f32 to vector<1x32xf32>
        %53 = arith.addf %51, %52 : vector<1x32xf32>
        %54 = math.rsqrt %53 : vector<1x32xf32>
        %c0_33 = arith.constant 0 : index
        %c0_34 = arith.constant 0 : index
        %55 = vector.load %arg3[%c0_33, %c0_34] : memref<1x32xf32, #tpu.memory_space<vmem>>, vector<1x32xf32>
        %56 = arith.mulf %55, %54 : vector<1x32xf32>
        %c0_35 = arith.constant 0 : index
        %c0_36 = arith.constant 0 : index
        %57 = vector.load %arg4[%c0_35, %c0_36] : memref<1x32xf32, #tpu.memory_space<vmem>>, vector<1x32xf32>
        %58 = arith.mulf %43, %56 : vector<1x32xf32>
        %59 = arith.subf %57, %58 : vector<1x32xf32>
        %c0_37 = arith.constant 0 : index
        %c0_38 = arith.constant 0 : index
        %60 = vector.load %arg5[%c0_37, %c0_38] : memref<64x32xbf16, #tpu.memory_space<vmem>>, vector<64x32xbf16>
        %61 = arith.extf %60 : vector<64x32xbf16> to vector<64x32xf32>
        %62 = vector.broadcast %56 : vector<1x32xf32> to vector<64x32xf32>
        %63 = arith.mulf %61, %62 : vector<64x32xf32>
        %c0_39 = arith.constant 0 : index
        %c0_40 = arith.constant 0 : index
        %64 = vector.load %arg14[%c0_39, %c0_40] : memref<64x32xf32, #tpu.memory_space<vmem>>, vector<64x32xf32>
        tpu.vector_store %arg14[%c0_39, %c0_40], %63 {strides = array<i32>} : memref<64x32xf32, #tpu.memory_space<vmem>>, vector<64x32xf32>,
        %65 = vector.shape_cast %59 : vector<1x32xf32> to vector<1x32xf32>
        %66 = vector.broadcast %65 : vector<1x32xf32> to vector<8x32xf32>
        %c0_41 = arith.constant 0 : index
        %c0_42 = arith.constant 0 : index
        %67 = vector.load %arg6[%c0_41, %c0_42] : memref<1x64xf32, #tpu.memory_space<vmem>>, vector<1x64xf32>
        %cst_43 = arith.constant dense<0.000000e+00> : vector<8x64xf32>
        %68 = tpu.matmul %66, %61, %cst_43 {dimension_numbers = #tpu.dot_dimension_numbers<[1], [1], [0], [0], [0, 0, 1, 0], [], []>} : vector<8x32xf32>, vector<64x32xf32>, vector<8x64xf32> -> vector<8x64xf32>
        %69 = vector.extract_strided_slice %68 {offsets = [0, 0], sizes = [1, 64], strides = [1, 1]} : vector<8x64xf32> to vector<1x64xf32>
        %70 = arith.addf %67, %69 : vector<1x64xf32>
        %c0_44 = arith.constant 0 : index
        %c0_45 = arith.constant 0 : index
        %71 = vector.load %arg15[%c0_44, %c0_45] : memref<1x64xf32, #tpu.memory_space<vmem>>, vector<1x64xf32>
        tpu.vector_store %arg15[%c0_44, %c0_45], %70 {strides = array<i32>} : memref<1x64xf32, #tpu.memory_space<vmem>>, vector<1x64xf32>,
      } else {
      }
    } else {
    }
    %c1_i32 = arith.constant 1 : i32
    %3 = arith.cmpi eq, %arg0, %c1_i32 : i32
    %4 = arith.extui %3 : i1 to i32
    %c0_i32_1 = arith.constant 0 : i32
    %5 = arith.cmpi ne, %4, %c0_i32_1 : i32
    scf.if %5 {
      %6 = arith.index_cast %arg1 : i32 to index
      %c0 = arith.constant 0 : index
      %c0_2 = arith.constant 0 : index
      %7 = vector.load %arg10[%6, %c0, %c0_2] : memref<1x128x32xf32, #tpu.memory_space<vmem>>, vector<1x128x32xf32>
      %8 = vector.shape_cast %7 : vector<1x128x32xf32> to vector<128x32xf32>
      %c0_3 = arith.constant 0 : index
      %c0_4 = arith.constant 0 : index
      %9 = vector.load %arg14[%c0_3, %c0_4] : memref<64x32xf32, #tpu.memory_space<vmem>>, vector<64x32xf32>
      %c0_5 = arith.constant 0 : index
      %c0_6 = arith.constant 0 : index
      %10 = vector.load %arg15[%c0_5, %c0_6] : memref<1x64xf32, #tpu.memory_space<vmem>>, vector<1x64xf32>
      %c0_7 = arith.constant 0 : index
      %c0_8 = arith.constant 0 : index
      %11 = vector.load %arg7[%c0_7, %c0_8] : memref<32x64xbf16, #tpu.memory_space<vmem>>, vector<32x64xbf16>
      %c0_9 = arith.constant 0 : index
      %c0_10 = arith.constant 0 : index
      %12 = vector.load %arg8[%c0_9, %c0_10] : memref<1x32xf32, #tpu.memory_space<vmem>>, vector<1x32xf32>
      %13 = arith.truncf %8 : vector<128x32xf32> to vector<128x32xbf16>
      %14 = arith.truncf %9 : vector<64x32xf32> to vector<64x32xbf16>
      %cst = arith.constant dense<0.000000e+00> : vector<128x64xf32>
      %15 = tpu.matmul %13, %14, %cst {dimension_numbers = #tpu.dot_dimension_numbers<[1], [1], [0], [0], [0, 0, 1, 0], [], []>} : vector<128x32xbf16>, vector<64x32xbf16>, vector<128x64xf32> -> vector<128x64xf32>
      %16 = vector.broadcast %10 : vector<1x64xf32> to vector<128x64xf32>
      %17 = arith.addf %15, %16 : vector<128x64xf32>
      %cst_11 = arith.constant 0.000000e+00 : f32
      %18 = vector.broadcast %cst_11 : f32 to vector<128x64xf32>
      %19 = arith.maximumf %17, %18 : vector<128x64xf32>
      %20 = arith.truncf %19 : vector<128x64xf32> to vector<128x64xbf16>
      %cst_12 = arith.constant dense<0.000000e+00> : vector<128x32xf32>
      %21 = tpu.matmul %20, %11, %cst_12 {dimension_numbers = #tpu.dot_dimension_numbers<[1], [1], [0], [0], [0, 0, 1, 0], [], []>} : vector<128x64xbf16>, vector<32x64xbf16>, vector<128x32xf32> -> vector<128x32xf32>
      %22 = vector.broadcast %12 : vector<1x32xf32> to vector<128x32xf32>
      %23 = arith.addf %21, %22 : vector<128x32xf32>
      %24 = arith.addf %23, %8 : vector<128x32xf32>
      %c0_13 = arith.constant 0 : index
      %c0_14 = arith.constant 0 : index
      %25 = vector.load %arg9[%c0_13, %c0_14] : memref<128x32xf32, #tpu.memory_space<vmem>>, vector<128x32xf32>
      tpu.vector_store %arg9[%c0_13, %c0_14], %24 {strides = array<i32>} : memref<128x32xf32, #tpu.memory_space<vmem>>, vector<128x32xf32>,
    } else {
    }
    return
  }
  func.func @transform_0(%arg0: i32, %arg1: i32) -> (i32, i32) {
    %c1_i32 = arith.constant 1 : i32
    %0 = arith.subi %c1_i32, %arg0 : i32
    %1 = arith.muli %arg1, %0 : i32
    %c0_i32 = arith.constant 0 : i32
    %2 = arith.muli %c0_i32, %arg0 : i32
    %3 = arith.addi %1, %2 : i32
    %c0_i32_0 = arith.constant 0 : i32
    %c0_i32_1 = arith.constant 0 : i32
    return %3, %c0_i32_0 : i32, i32
  }
  func.func @transform_1(%arg0: i32, %arg1: i32) -> (i32, i32) {
    %c0_i32 = arith.constant 0 : i32
    %c0_i32_0 = arith.constant 0 : i32
    %c0_i32_1 = arith.constant 0 : i32
    return %c0_i32, %c0_i32_0 : i32, i32
  }
  func.func @transform_2(%arg0: i32, %arg1: i32) -> (i32, i32) {
    %c0_i32 = arith.constant 0 : i32
    %c0_i32_0 = arith.constant 0 : i32
    %c0_i32_1 = arith.constant 0 : i32
    return %c0_i32, %c0_i32_0 : i32, i32
  }
  func.func @transform_3(%arg0: i32, %arg1: i32) -> (i32, i32) {
    %c0_i32 = arith.constant 0 : i32
    %c0_i32_0 = arith.constant 0 : i32
    %c0_i32_1 = arith.constant 0 : i32
    return %c0_i32, %c0_i32_0 : i32, i32
  }
  func.func @transform_4(%arg0: i32, %arg1: i32) -> (i32, i32) {
    %c0_i32 = arith.constant 0 : i32
    %c0_i32_0 = arith.constant 0 : i32
    %c0_i32_1 = arith.constant 0 : i32
    return %c0_i32, %c0_i32_0 : i32, i32
  }
  func.func @transform_5(%arg0: i32, %arg1: i32) -> (i32, i32) {
    %c0_i32 = arith.constant 0 : i32
    %c0_i32_0 = arith.constant 0 : i32
    %c0_i32_1 = arith.constant 0 : i32
    return %c0_i32, %c0_i32_0 : i32, i32
  }
  func.func @transform_6(%arg0: i32, %arg1: i32) -> (i32, i32) {
    %c0_i32 = arith.constant 0 : i32
    %c0_i32_0 = arith.constant 0 : i32
    %c0_i32_1 = arith.constant 0 : i32
    return %c0_i32, %c0_i32_0 : i32, i32
  }
  func.func @transform_7(%arg0: i32, %arg1: i32) -> (i32, i32) {
    %0 = arith.muli %arg1, %arg0 : i32
    %c0_i32 = arith.constant 0 : i32
    %c0_i32_0 = arith.constant 0 : i32
    return %0, %c0_i32 : i32, i32
  }
}

</mosaic_0001>

<bundles_post_ra>
// kernel: mlp_layer_forward.3
= control target key start
LH: loop header
LB: loop body
LE: loop exit
PB: predicated region body
PF: predicated region fallthrough
CT: control target
= control target key end

     0   :  { %s1365_s24 = smov 0   ;;  %s1367_s25 = smov 0   ;;  %s1805_s0 = inlined_call_operand.vmem [shape: f32[128,32], index: 0, kind: input, shape index: {}]   ;;  %s1806_s1 = inlined_call_operand.vmem [shape: f32[1,32], index: 1, kind: input, shape index: {}]   ;;  %s1807_s2 = inlined_call_operand.vmem [shape: f32[1,32], index: 2, kind: input, shape index: {}]   ;;  %s1808_s3 = inlined_call_operand.vmem [shape: bf16[64,32], index: 3, kind: input, shape index: {}]   ;;  %s1809_s4 = inlined_call_operand.vmem [shape: f32[1,64], index: 4, kind: input, shape index: {}]   ;;  %s1810_s5 = inlined_call_operand.vmem [shape: bf16[32,64], index: 5, kind: input, shape index: {}]   ;;  %s1811_s6 = inlined_call_operand.vmem [shape: f32[1,32], index: 6, kind: input, shape index: {}]   ;;  %s1812_s7 = inlined_call_operand.vmem [shape: f32[128,32], index: 7, kind: output, shape index: {}]  }
   0x1   :  { %s1369_s26 = smov 0  }
   0x2 LB: > { %s29_s27 = sadd.s32 1, %s1317_s25  ;;  %p1113_p0 = scmp.ge.s32.totalorder %s1321_s26, 1  ;;  %s1321_s26 = sphi %s1369_s26, %s17_s26   ;;  %s1317_s25 = sphi %s1367_s25, %s1814_s25   ;;  %s1313_s24 = sphi %s1365_s24, %s1813_s24  }
   0x3   : > { %p31_p1 = scmp.ge.s32.totalorder %s29_s27, 2  ;;  %p260_p2 = scmp.lt.s32.totalorder %s1321_s26, 3 }
   0x5   : > { %s1816_s27 = smov (%p31_p1, %s29_s27), 0  ;;  %p261_p3 = pnand %p1113_p0, %p260_p2 }
   0x6   : > { %p1114_p4 = scmp.ne.s32.totalorder (!%p261_p3), %s1313_s24, 0 }
   0x7   : > { %264 = sbr.rel (%p261_p3) target bundleno = 791 (0x317), region = 48 }
   0xc   : > { %317 = sbr.rel (%p1114_p4) target bundleno = 315 (0x13b), region = 52 }
  0x11   : > { %v318_v0 = vld [vmem:[%s1805_s0] sm:$0xff]  ;;  %v319_v1 = vld [vmem:[%s1805_s0 + $0x8] sm:$0xff]  ;;  %v320_v2 = vld [vmem:[%s1805_s0 + $0x10] sm:$0xff]  ;;  %vm338_vm0 = vcmask 253952   ;;  %vm344_vm1 = vcmask 261120   ;;  %v1323_v6 = vmov 0.0  }
  0x12   : > { %v321_v3 = vld [vmem:[%s1805_s0 + $0x18] sm:$0xff]  ;;  %v322_v4 = vld [vmem:[%s1805_s0 + $0x20] sm:$0xff]  ;;  %v323_v5 = vld [vmem:[%s1805_s0 + $0x28] sm:$0xff]  ;;  %339 = vst.msk [vmem:[#allocation3] sm:$0x1] %vm338_vm0, %v318_v0  ;;  %1200 = vmatprep.subr.mxu0 %v1323_v6  ;;  %vm1324_vm2 = vmmov 0  }
  0x13   : > { %340 = vst.msk [vmem:[#allocation4] sm:$0x1] %vm338_vm0, %v1323_v6  ;;  %341 = vst.msk [vmem:[#allocation5] sm:$0x1] %vm338_vm0, %v1323_v6  ;;  %v324_v7 = vld [vmem:[%s1805_s0 + $0x30] sm:$0xff]  ;;  %v325_v8 = vld [vmem:[%s1805_s0 + $0x38] sm:$0xff]  ;;  %1216 = vmatprep.mubr.msk.f32.mxu0 %vm1324_vm2, %v1323_v6 }
  0x14   : > { %345 = vst.msk [vmem:[#allocation2] sm:$0xff] %vm344_vm1, %v318_v0  ;;  %346 = vst.msk [vmem:[#allocation2 + $0x8] sm:$0xff] %vm344_vm1, %v319_v1  ;;  %v326_v9 = vld [vmem:[%s1805_s0 + $0x40] sm:$0xff]  ;;  %v1429_v10 = vld [vmem:[%s1805_s0 + $0x48] sm:$0xff]  ;;  %vm646_vm3 = vcmask 516096  }
  0x15   : > { %347 = vst.msk [vmem:[#allocation2 + $0x10] sm:$0xff] %vm344_vm1, %v320_v2  ;;  %348 = vst.msk [vmem:[#allocation2 + $0x18] sm:$0xff] %vm344_vm1, %v321_v3  ;;  %v1434_v11 = vld [vmem:[%s1805_s0 + $0x50] sm:$0xff]  ;;  %v1439_v12 = vld [vmem:[%s1805_s0 + $0x58] sm:$0xff] }
  0x16   : > { %349 = vst.msk [vmem:[#allocation2 + $0x20] sm:$0xff] %vm344_vm1, %v322_v4  ;;  %350 = vst.msk [vmem:[#allocation2 + $0x28] sm:$0xff] %vm344_vm1, %v323_v5  ;;  %v1447_v13 = vld [vmem:[%s1805_s0 + $0x60] sm:$0xff]  ;;  %v1452_v14 = vld [vmem:[%s1805_s0 + $0x68] sm:$0xff] }
  0x17   : > { %351 = vst.msk [vmem:[#allocation2 + $0x30] sm:$0xff] %vm344_vm1, %v324_v7  ;;  %352 = vst.msk [vmem:[#allocation2 + $0x38] sm:$0xff] %vm344_vm1, %v325_v8  ;;  %v1457_v15 = vld [vmem:[%s1805_s0 + $0x70] sm:$0xff]  ;;  %v1468_v16 = vld [vmem:[%s1805_s0 + $0x78] sm:$0xff] }
  0x18   : > { %353 = vst.msk [vmem:[#allocation2 + $0x40] sm:$0xff] %vm344_vm1, %v326_v9  ;;  %354 = vst.msk [vmem:[#allocation2 + $0x48] sm:$0xff] %vm344_vm1, %v1429_v10  ;;  %v1479_v17 = vld [vmem:[%s1808_s3 + $0x18] sm:$0xff]   ;;  %v1497_v24 = vld [vmem:[%s1808_s3 + $0x10] sm:$0xff]  }
  0x19   : > { %355 = vst.msk [vmem:[#allocation2 + $0x50] sm:$0xff] %vm344_vm1, %v1434_v11  ;;  %356 = vst.msk [vmem:[#allocation2 + $0x58] sm:$0xff] %vm344_vm1, %v1439_v12  ;;  %v1165_v18 = vunpack.c.h.bf16 %v1479_v17  ;;  %v1484_v19 = vld [vmem:[#allocation3] ss:$0 sm:$0xff]  ;;  %v1164_v20 = vunpack.c.l.bf16 %v1479_v17  ;;  %v1161_v26 = vunpack.c.h.bf16 %v1497_v24  ;;  %v1160_v35 = vunpack.c.l.bf16 %v1497_v24  ;;  %v1521_v38 = vld [vmem:[%s1808_s3 + $0x8] sm:$0xff]  }
  0x1a   : > { %357 = vst.msk [vmem:[#allocation2 + $0x60] sm:$0xff] %vm344_vm1, %v1447_v13  ;;  %358 = vst.msk [vmem:[#allocation2 + $0x68] sm:$0xff] %vm344_vm1, %v1452_v14  ;;  %v368_v21 = vsub.f32 %v318_v0, %v1484_v19  ;;  %v369_v22 = vsub.f32 %v319_v1, %v1484_v19  ;;  %v370_v23 = vsub.f32 %v320_v2, %v1484_v19  ;;  %v1157_v47 = vunpack.c.h.bf16 %v1521_v38  ;;  %v1550_v1 = vld [vmem:[%s1808_s3] sm:$0xff]  }
  0x1b   : > { %359 = vst.msk [vmem:[#allocation2 + $0x70] sm:$0xff] %vm344_vm1, %v1457_v15  ;;  %360 = vst.msk [vmem:[#allocation2 + $0x78] sm:$0xff] %vm344_vm1, %v1468_v16  ;;  %1201 = vmatpush3.xpose.msk.msra.mxu0 %vm344_vm1, %v1165_v18  ;;  %v371_v25 = vsub.f32 %v321_v3, %v1484_v19  ;;  %v372_v27 = vsub.f32 %v322_v4, %v1484_v19  ;;  %v373_v32 = vsub.f32 %v323_v5, %v1484_v19  ;;  %v548_v24 = vld [vmem:[%s1809_s4] sm:$0x1] }
  0x1c   : > { %1202 = vmatprep.subr.mxu0 %v1323_v6  ;;  %v385_v28 = vsel %vm344_vm1, %v368_v21, 0.0  ;;  %v386_v29 = vsel %vm344_vm1, %v369_v22, 0.0  ;;  %v388_v30 = vsel %vm344_vm1, %v370_v23, 0.0  ;;  %v374_v36 = vsub.f32 %v324_v7, %v1484_v19 }
  0x1d   : > { %v387_v31 = vadd.f32 %v386_v29, %v385_v28  ;;  %v390_v33 = vsel %vm344_vm1, %v371_v25, 0.0  ;;  %v392_v37 = vsel %vm344_vm1, %v372_v27, 0.0  ;;  %v426_v40 = vmul.f32 %v368_v21, %v368_v21 }
  0x1e   : > { %v427_v41 = vmul.f32 %v369_v22, %v369_v22  ;;  %v428_v42 = vmul.f32 %v370_v23, %v370_v23  ;;  %v375_v43 = vsub.f32 %v325_v8, %v1484_v19  ;;  %v394_v44 = vsel %vm344_vm1, %v373_v32, 0.0 }
  0x1f   : > { %1203 = vmatpush3.xpose.msk.msra.mxu0 %vm344_vm1, %v1164_v20  ;;  %v389_v34 = vadd.f32 %v388_v30, %v387_v31  ;;  %v429_v46 = vmul.f32 %v371_v25, %v371_v25  ;;  %v376_v48 = vsub.f32 %v326_v9, %v1484_v19  ;;  %v396_v49 = vsel %vm344_vm1, %v374_v36, 0.0 }
  0x20   : > { %1204 = vmatprep.subr.mxu0 %v1323_v6  ;;  %v430_v50 = vmul.f32 %v372_v27, %v372_v27  ;;  %v442_v52 = vsel %vm344_vm1, %v426_v40, 0.0  ;;  %v443_v53 = vsel %vm344_vm1, %v427_v41, 0.0  ;;  %v445_v54 = vsel %vm344_vm1, %v428_v42, 0.0 }
  0x21   : > { %v391_v39 = vadd.f32 %v390_v33, %v389_v34  ;;  %v377_v55 = vsub.f32 %v1429_v10, %v1484_v19  ;;  %v398_v56 = vsel %vm344_vm1, %v375_v43, 0.0  ;;  %v444_v57 = vadd.f32 %v443_v53, %v442_v52 }
  0x22   : > { %v431_v59 = vmul.f32 %v373_v32, %v373_v32  ;;  %v447_v60 = vsel %vm344_vm1, %v429_v46, 0.0  ;;  %v1156_v61 = vunpack.c.l.bf16 %v1521_v38  ;;  %v378_v62 = vsub.f32 %v1434_v11, %v1484_v19 }
  0x23   : > { %1205 = vmatpush3.xpose.msk.msra.mxu0 %vm344_vm1, %v1161_v26  ;;  %v393_v45 = vadd.f32 %v392_v37, %v391_v39  ;;  %v400_v63 = vsel %vm344_vm1, %v376_v48, 0.0  ;;  %v446_v0 = vadd.f32 %v445_v54, %v444_v57  ;;  %v432_v3 = vmul.f32 %v374_v36, %v374_v36 }
  0x24   : > { %1206 = vmatprep.subr.mxu0 %v1323_v6  ;;  %v449_v4 = vsel %vm344_vm1, %v430_v50, 0.0  ;;  %v379_v5 = vsub.f32 %v1439_v12, %v1484_v19  ;;  %v402_v7 = vsel %vm344_vm1, %v377_v55, 0.0  ;;  %v433_v10 = vmul.f32 %v375_v43, %v375_v43 }
  0x25   : > { %v395_v51 = vadd.f32 %v394_v44, %v393_v45  ;;  %v448_v8 = vadd.f32 %v447_v60, %v446_v0  ;;  %v451_v11 = vsel %vm344_vm1, %v431_v59, 0.0  ;;  %v1153_v21 = vunpack.c.h.bf16 %v1550_v1 }
  0x26   : > { %v380_v22 = vsub.f32 %v1447_v13, %v1484_v19  ;;  %v404_v23 = vsel %vm344_vm1, %v378_v62, 0.0  ;;  %v434_v27 = vmul.f32 %v376_v48, %v376_v48  ;;  %v453_v28 = vsel %vm344_vm1, %v432_v3, 0.0 }
  0x27   : > { %1207 = vmatpush3.xpose.msk.msra.mxu0 %vm344_vm1, %v1160_v35  ;;  %v397_v58 = vadd.f32 %v396_v49, %v395_v51  ;;  %v450_v25 = vadd.f32 %v449_v4, %v448_v8  ;;  %v381_v29 = vsub.f32 %v1452_v14, %v1484_v19  ;;  %v406_v30 = vsel %vm344_vm1, %v379_v5, 0.0 }
  0x28   : > { %1208 = vmatprep.subr.mxu0 %v1323_v6  ;;  %v435_v33 = vmul.f32 %v377_v55, %v377_v55  ;;  %v455_v34 = vsel %vm344_vm1, %v433_v10, 0.0  ;;  %v1152_v13 = vunpack.c.l.bf16 %v1550_v1  ;;  %v382_v36 = vsub.f32 %v1457_v15, %v1484_v19 }
  0x29   : > { %v399_v2 = vadd.f32 %v398_v56, %v397_v58  ;;  %v452_v31 = vadd.f32 %v451_v11, %v450_v25  ;;  %v408_v37 = vsel %vm344_vm1, %v380_v22, 0.0  ;;  %v436_v40 = vmul.f32 %v378_v62, %v378_v62 }
  0x2a   : > { %v457_v41 = vsel %vm344_vm1, %v434_v27, 0.0  ;;  %v383_v42 = vsub.f32 %v1468_v16, %v1484_v19  ;;  %v410_v43 = vsel %vm344_vm1, %v381_v29, 0.0  ;;  %v437_v46 = vmul.f32 %v379_v5, %v379_v5 }
  0x2b   : > { %1209 = vmatpush3.xpose.msk.msra.mxu0 %vm344_vm1, %v1157_v47  ;;  %v401_v9 = vadd.f32 %v400_v63, %v399_v2  ;;  %v454_v39 = vadd.f32 %v453_v28, %v452_v31  ;;  %v459_v48 = vsel %vm344_vm1, %v435_v33, 0.0  ;;  %v438_v50 = vmul.f32 %v380_v22, %v380_v22  ;;  %v384_v22 = vld [vmem:[#allocation4] sm:$0x1] }
  0x2c   : > { %1210 = vmatprep.subr.mxu0 %v1323_v6  ;;  %v461_v51 = vsel %vm344_vm1, %v436_v40, 0.0  ;;  %v414_v16 = vsel %vm344_vm1, %v383_v42, 0.0  ;;  %v439_v53 = vmul.f32 %v381_v29, %v381_v29  ;;  %v463_v54 = vsel %vm344_vm1, %v437_v46, 0.0 }
  0x2d   : > { %v403_v12 = vadd.f32 %v402_v7, %v401_v9  ;;  %v456_v44 = vadd.f32 %v455_v34, %v454_v39  ;;  %v440_v57 = vmul.f32 %v382_v36, %v382_v36  ;;  %v465_v58 = vsel %vm344_vm1, %v438_v50, 0.0  ;;  %v500_v50 = vld [vmem:[%s1806_s1] sm:$0x1] }
  0x2e   : > { %v441_v62 = vmul.f32 %v383_v42, %v383_v42  ;;  %v467_v63 = vsel %vm344_vm1, %v439_v53, 0.0 }
  0x2f   : > { %1211 = vmatpush3.xpose.msk.msra.mxu0 %vm344_vm1, %v1156_v61  ;;  %v405_v32 = vadd.f32 %v404_v23, %v403_v12  ;;  %v458_v15 = vadd.f32 %v457_v41, %v456_v44  ;;  %v469_v3 = vsel %vm344_vm1, %v440_v57, 0.0 }
  0x30   : > { %1212 = vmatprep.subr.mxu0 %v1323_v6  ;;  %v471_v7 = vsel %vm344_vm1, %v441_v62, 0.0 }
  0x31   : > { %v407_v14 = vadd.f32 %v406_v30, %v405_v32  ;;  %v460_v19 = vadd.f32 %v459_v48, %v458_v15  ;;  %v484_v30 = vld [vmem:[#allocation3] sm:$0x1]  ;;  %v425_v32 = vld [vmem:[#allocation5] sm:$0x1]  ;;  %v522_v15 = vlaneseq }
  0x32   : > { %v486_v34 = vmul.f32 112.0, %v484_v30 }
  0x33   : > { %1213 = vmatpush3.xpose.msk.msra.mxu0 %vm344_vm1, %v1153_v21  ;;  %v409_v45 = vadd.f32 %v408_v37, %v407_v14  ;;  %v462_v55 = vadd.f32 %v461_v51, %v460_v19  ;;  %v489_v14 = vmul.f32 %v484_v30, %v484_v30 }
  0x34   : > { %1214 = vmatprep.subr.mxu0 %v1323_v6  ;;  %v412_v6 = vsel %vm344_vm1, %v382_v36, 0.0 }
  0x35   : > { %v411_v49 = vadd.f32 %v410_v43, %v409_v45  ;;  %v464_v59 = vadd.f32 %v463_v54, %v462_v55  ;;  %v490_v40 = vmul.f32 112.0, %v489_v14  ;;  %v502_v55 = vld [vmem:[%s1807_s2] sm:$0x1] }
  0x37   : > { %1215 = vmatpush3.xpose.msk.msra.mxu0 %vm344_vm1, %v1152_v13  ;;  %v413_v52 = vadd.f32 %v412_v6, %v411_v49  ;;  %v466_v0 = vadd.f32 %v465_v58, %v464_v59  ;;  %v523_v49 = vshrl.u32 %v522_v15, 7 }
  0x39   : > { %v415_v56 = vadd.f32 %v414_v16, %v413_v52  ;;  %v468_v4 = vadd.f32 %v467_v63, %v466_v0  ;;  %v524_v52 = vsub.s32 0, %v523_v49 }
  0x3b   : > { %v416_v60 = vrot.slane %v415_v56, 4  ;;  %v470_v8 = vadd.f32 %v469_v3, %v468_v4 }
  0x3d   : > { %v417_v2 = vadd.f32 %v416_v60, %v415_v56  ;;  %v472_v10 = vadd.f32 %v471_v7, %v470_v8 }
  0x3f   : > { %v418_v5 = vrot.slane %v417_v2, 2  ;;  %v473_v23 = vrot.slane %v472_v10, 4 }
  0x41   : > { %v419_v9 = vadd.f32 %v418_v5, %v417_v2  ;;  %v474_v12 = vadd.f32 %v473_v23, %v472_v10 }
  0x43   : > { %v420_v11 = vrot.slane %v419_v9, 1  ;;  %v475_v28 = vrot.slane %v474_v12, 2 }
  0x45   : > { %v421_v25 = vadd.f32 %v420_v11, %v419_v9  ;;  %v476_v29 = vadd.f32 %v475_v28, %v474_v12 }
  0x47   : > { %v422_v27 = vadd.f32 %v421_v25, %v384_v22  ;;  %v477_v31 = vrot.slane %v476_v29, 1 }
  0x49   : > { %424 = vst.msk [vmem:[#allocation4] sm:$0x1] %vm338_vm0, %v422_v27  ;;  %v478_v33 = vadd.f32 %v477_v31, %v476_v29 }
  0x4b   : > { %v479_v36 = vadd.f32 %v478_v33, %v425_v32 }
  0x4d   : > { %480 = vst.msk [vmem:[#allocation5] sm:$0x1] %vm338_vm0, %v479_v36 }
  0x50   : > { %v485_v37 = vld [vmem:[#allocation4] sm:$0x1] }
  0x51   : > { %v487_v39 = vadd.f32 %v486_v34, %v485_v37 }
  0x53   : > { %v492_v41 = vmul.f32 0.0625, %v487_v39 }
  0x54   : > { %v488_v42 = vld [vmem:[#allocation5] sm:$0x1] }
  0x55   : > { %v491_v43 = vsub.f32 %v488_v42, %v490_v40  ;;  %v495_v44 = vmul.f32 %v492_v41, %v492_v41  ;;  %v493_v51 = vadd.f32 %v492_v41, %v484_v30 }
  0x57   : > { %v494_v45 = vmul.f32 0.0625, %v491_v43 }
  0x59   : > { %v496_v46 = vsub.f32 %v494_v45, %v495_v44 }
  0x5b   : > { %v497_v48 = vmax.f32 %v496_v46, 0.0 }
  0x5d   : > { %v498_v6 = vadd.f32 1e-05, %v497_v48 }
  0x5f   : > { %1295 = vrsqrt.f32 %v498_v6 }
  0x6c   : > { %v1296_v16 = vpop.eup %1295 }
  0x6d   : > { %v501_v19 = vmul.f32 %v1296_v16, %v500_v50 }
  0x6f   : > { %v525_v53 = vrot.slane %v501_v19, %v524_v52  ;;  %v503_v54 = vmul.f32 %v501_v19, %v493_v51 }
  0x71   : > { %v533_v56 = vmul.f32 %v1164_v20, %v525_v53  ;;  %v534_v57 = vmul.f32 %v1165_v18, %v525_v53  ;;  %v532_v58 = vmul.f32 %v1161_v26, %v525_v53  ;;  %v531_v59 = vmul.f32 %v1160_v35, %v525_v53 }
  0x72   : > { %v530_v60 = vmul.f32 %v1157_v47, %v525_v53  ;;  %v529_v62 = vmul.f32 %v1156_v61, %v525_v53  ;;  %v528_v63 = vmul.f32 %v1153_v21, %v525_v53  ;;  %v527_v20 = vmul.f32 %v1152_v13, %v525_v53 }
  0x73   : > { %541 = vst.msk [vmem:[#allocation6 + $0x30] sm:$0xff] %vm344_vm1, %v533_v56  ;;  %542 = vst.msk [vmem:[#allocation6 + $0x38] sm:$0xff] %vm344_vm1, %v534_v57  ;;  %v504_v17 = vsub.f32 %v502_v55, %v503_v54 }
  0x74   : > { %540 = vst.msk [vmem:[#allocation6 + $0x28] sm:$0xff] %vm344_vm1, %v532_v58  ;;  %539 = vst.msk [vmem:[#allocation6 + $0x20] sm:$0xff] %vm344_vm1, %v531_v59 }
  0x75   : > { %538 = vst.msk [vmem:[#allocation6 + $0x18] sm:$0xff] %vm344_vm1, %v530_v60  ;;  %537 = vst.msk [vmem:[#allocation6 + $0x10] sm:$0xff] %vm344_vm1, %v529_v62  ;;  %v547_v18 = vrot.slane %v504_v17, %v524_v52 }
  0x76   : > { %536 = vst.msk [vmem:[#allocation6 + $0x8] sm:$0xff] %vm344_vm1, %v528_v63  ;;  %535 = vst.msk [vmem:[#allocation6] sm:$0xff] %vm344_vm1, %v527_v20 }
  0x77   : > { %1217 = vmatmul.mubr.msk.f32.vlgmr.msra.gmra.mxu0 %vm344_vm1, %v547_v18 }
 0x137   : > { %v641_v26 = vpop.f32.mrf.mxu0 }
 0x138   : > { %v645_v35 = vadd.f32 %v641_v26, %v548_v24 }
 0x139   : > { %v1218_v38 = vpop.f32.mrf.mxu0 }
 0x13a   : > { %647 = vst.msk [vmem:[#allocation7] sm:$0x1] %vm646_vm3, %v645_v35 }
 0x13b PF: > { %p1125_p5 = scmp.ne.s32.totalorder %s1313_s24, 1 }
 0x13d   : > { %651 = sbr.rel (%p1125_p5) target bundleno = 791 (0x317), region = 64 }
 0x142   : > { %v676_v47 = vld [vmem:[#allocation6 + $0x30] sm:$0xff]  ;;  %v677_v61 = vld [vmem:[#allocation6 + $0x38] sm:$0xff]  ;;  %vm702_vm4 = vcmask 261120   ;;  %v674_v1 = vld [vmem:[#allocation6 + $0x20] sm:$0xff]  ;;  %vm876_vm5 = vcmask 523264  }
 0x143   : > { %v695_v21 = vpack.c.bf16 %v677_v61, %v676_v47  ;;  %v675_v13 = vld [vmem:[#allocation6 + $0x28] sm:$0xff]  ;;  %v1631_v2 = vld [vmem:[#allocation2] sm:$0xff]  ;;  %v672_v7 = vld [vmem:[#allocation6 + $0x10] sm:$0xff] }
 0x144   : > { %v694_v0 = vpack.c.bf16 %v675_v13, %v674_v1  ;;  %v1635_v4 = vld [vmem:[#allocation2 + $0x8] sm:$0xff]  ;;  %v673_v8 = vld [vmem:[#allocation6 + $0x18] sm:$0xff]  ;;  %v1651_v29 = vld [vmem:[#allocation2 + $0x10] sm:$0xff] }
 0x145   : > { %1263 = vmatprep.subr.msk.bf16.mxu0 %vm702_vm4, %v695_v21  ;;  %v737_v3 = vsel %vm702_vm4, %v695_v21, 0  ;;  %v684_v5 = vpack.c.bf16 %v1635_v4, %v1631_v2  ;;  %v1297_v9 = vld [vmem:[%s1810_s5 + $0x8] sm:$0xff]   ;;  %v693_v11 = vpack.c.bf16 %v673_v8, %v672_v7  ;;  %v1653_v30 = vld [vmem:[#allocation2 + $0x18] sm:$0xff]  ;;  %v1655_v31 = vld [vmem:[#allocation2 + $0x20] sm:$0xff] }
 0x146   : > { %1220 = vmatpush3.bf16.xpose.msra.mxu0 %v737_v3  ;;  %v734_v10 = vsel %vm702_vm4, %v694_v0, 0  ;;  %1267 = vmatprep.subr.msk.bf16.mxu1 %vm876_vm5, %v1297_v9  ;;  %v905_v22 = vsel %vm876_vm5, %v1297_v9, 0  ;;  %v670_v23 = vld [vmem:[#allocation6] sm:$0xff]  ;;  %v671_v25 = vld [vmem:[#allocation6 + $0x8] sm:$0xff]  ;;  %v685_v33 = vpack.c.bf16 %v1653_v30, %v1651_v29  ;;  %v1667_v37 = vld [vmem:[#allocation2 + $0x38] sm:$0xff] }
 0x147   : > { %1264 = vmatprep.subr.msk.bf16.mxu0 %vm702_vm4, %v694_v0  ;;  %1227 = vmatprep.mubr.msk.bf16.mxu0 %vm702_vm4, %v684_v5  ;;  %v731_v12 = vsel %vm702_vm4, %v693_v11, 0  ;;  %v692_v27 = vpack.c.bf16 %v671_v25, %v670_v23  ;;  %v1657_v32 = vld [vmem:[#allocation2 + $0x28] sm:$0xff]  ;;  %v1665_v36 = vld [vmem:[#allocation2 + $0x30] sm:$0xff]  ;;  %v1669_v39 = vld [vmem:[#allocation2 + $0x40] sm:$0xff] }
 0x148   : > { %1244 = vmatpush3.bf16.xpose.msra.mxu1 %v905_v22  ;;  %v686_v34 = vpack.c.bf16 %v1657_v32, %v1655_v31  ;;  %v1671_v14 = vld [vmem:[#allocation2 + $0x48] sm:$0xff]  ;;  %v687_v40 = vpack.c.bf16 %v1667_v37, %v1665_v36  ;;  %v1679_v42 = vld [vmem:[#allocation2 + $0x50] sm:$0xff]  ;;  %v1681_v43 = vld [vmem:[#allocation2 + $0x58] sm:$0xff] }
 0x149   : > { %v728_v28 = vsel %vm702_vm4, %v692_v27, 0  ;;  %v688_v41 = vpack.c.bf16 %v1671_v14, %v1669_v39  ;;  %v1683_v44 = vld [vmem:[#allocation2 + $0x60] sm:$0xff]  ;;  %v1685_v45 = vld [vmem:[#allocation2 + $0x68] sm:$0xff]  ;;  %v689_v46 = vpack.c.bf16 %v1681_v43, %v1679_v42  ;;  %v1693_v6 = vld [vmem:[#allocation2 + $0x70] sm:$0xff] }
 0x14a   : > { %v690_v48 = vpack.c.bf16 %v1685_v45, %v1683_v44  ;;  %v1695_v15 = vld [vmem:[#allocation2 + $0x78] sm:$0xff]  ;;  %v1298_v50 = vld [vmem:[%s1810_s5] sm:$0xff]  }
 0x14b   : > { %v691_v49 = vpack.c.bf16 %v1695_v15, %v1693_v6  ;;  %1268 = vmatprep.subr.msk.bf16.mxu1 %vm876_vm5, %v1298_v50  ;;  %v902_v51 = vsel %vm876_vm5, %v1298_v50, 0  ;;  %v1126_v52 = vld [vmem:[#allocation7] ss:$0 sm:$0xff] }
 0x14e   : > { %1222 = vmatpush3.bf16.xpose.msra.mxu0 %v734_v10 }
 0x14f   : > { %1265 = vmatprep.subr.msk.bf16.mxu0 %vm702_vm4, %v693_v11 }
 0x150   : > { %1246 = vmatpush3.bf16.xpose.msra.mxu1 %v902_v51 }
 0x156   : > { %1224 = vmatpush3.bf16.xpose.msra.mxu0 %v731_v12 }
 0x157   : > { %1266 = vmatprep.subr.msk.bf16.mxu0 %vm702_vm4, %v692_v27 }
 0x15e   : > { %1226 = vmatpush3.bf16.xpose.msra.mxu0 %v728_v28 }
 0x165   : > { %1228 = vmatmul.mubr.msk.bf16.vlgmr.msra.gmra.mxu0 %vm702_vm4, %v685_v33 }
 0x166   : > { %1231 = vmatprep.mubr.msk.bf16.mxu0 %vm702_vm4, %v686_v34 }
 0x16d   : > { %1232 = vmatmul.mubr.msk.bf16.gmra.mxu0 %vm702_vm4, %v687_v40 }
 0x16e   : > { %1235 = vmatprep.mubr.msk.bf16.mxu0 %vm702_vm4, %v688_v41 }
 0x175   : > { %1236 = vmatmul.mubr.msk.bf16.gmra.mxu0 %vm702_vm4, %v689_v46 }
 0x176   : > { %1239 = vmatprep.mubr.msk.bf16.mxu0 %vm702_vm4, %v690_v48 }
 0x17d   : > { %1240 = vmatmul.mubr.msk.bf16.gmra.mxu0 %vm702_vm4, %v691_v49 }
 0x225   : > { %v1229_v16 = vpop.f32.mrf.mxu0 }
 0x226   : > { %v782_v56 = vadd.f32 %v1229_v16, %v1126_v52 }
 0x227   : > { %v773_v19 = vpop.f32.mrf.mxu0 }
 0x228   : > { %v774_v54 = vadd.f32 %v1126_v52, %v773_v19  ;;  %v838_v20 = vmax.f32 %v782_v56, 0.0 }
 0x229   : > { %v1230_v53 = vpop.f32.mrf.mxu0 }
 0x22a   : > { %v785_v55 = vadd.f32 %v1230_v53, %v1126_v52  ;;  %v836_v62 = vmax.f32 %v774_v54, 0.0 }
 0x22b   : > { %v776_v57 = vpop.f32.mrf.mxu0 }
 0x22c   : > { %v777_v58 = vadd.f32 %v1126_v52, %v776_v57  ;;  %v839_v59 = vmax.f32 %v785_v55, 0.0 }
 0x22d   : > { %v1233_v60 = vpop.f32.mrf.mxu0 }
 0x22e   : > { %v837_v63 = vmax.f32 %v777_v58, 0.0  ;;  %v853_v24 = vpack.c.bf16 %v839_v59, %v838_v20  ;;  %v798_v47 = vadd.f32 %v1233_v60, %v1126_v52  ;;  %v1135_v60 = vld [vmem:[%s1811_s6] ss:$0 sm:$0xff] }
 0x22f   : > { %v789_v17 = vpop.f32.mrf.mxu0 }
 0x230   : > { %v852_v18 = vpack.c.bf16 %v837_v63, %v836_v62  ;;  %v790_v35 = vadd.f32 %v1126_v52, %v789_v17  ;;  %v842_v5 = vmax.f32 %v798_v47, 0.0 }
 0x231   : > { %v1234_v26 = vpop.f32.mrf.mxu0 }
 0x232   : > { %v801_v38 = vadd.f32 %v1234_v26, %v1126_v52  ;;  %1247 = vmatprep.mubr.msk.bf16.mxu1 %vm876_vm5, %v852_v18  ;;  %v840_v0 = vmax.f32 %v790_v35, 0.0 }
 0x233   : > { %v792_v61 = vpop.f32.mrf.mxu0  ;;  %1248 = vmatmul.mubr.msk.bf16.vlgmr.msra.gmra.mxu1 %vm876_vm5, %v853_v24 }
 0x234   : > { %v793_v1 = vadd.f32 %v1126_v52, %v792_v61  ;;  %v843_v21 = vmax.f32 %v801_v38, 0.0 }
 0x235   : > { %v1237_v13 = vpop.f32.mrf.mxu0 }
 0x236   : > { %v841_v3 = vmax.f32 %v793_v1, 0.0  ;;  %v855_v9 = vpack.c.bf16 %v843_v21, %v842_v5  ;;  %v814_v23 = vadd.f32 %v1237_v13, %v1126_v52 }
 0x237   : > { %v805_v7 = vpop.f32.mrf.mxu0 }
 0x238   : > { %v854_v8 = vpack.c.bf16 %v841_v3, %v840_v0  ;;  %v806_v11 = vadd.f32 %v1126_v52, %v805_v7  ;;  %v846_v40 = vmax.f32 %v814_v23, 0.0 }
 0x239   : > { %v1238_v10 = vpop.f32.mrf.mxu0 }
 0x23a   : > { %v817_v22 = vadd.f32 %v1238_v10, %v1126_v52  ;;  %1251 = vmatprep.mubr.msk.bf16.mxu1 %vm876_vm5, %v854_v8  ;;  %v844_v33 = vmax.f32 %v806_v11, 0.0 }
 0x23b   : > { %v808_v25 = vpop.f32.mrf.mxu0  ;;  %1252 = vmatmul.mubr.msk.bf16.gmra.mxu1 %vm876_vm5, %v855_v9 }
 0x23c   : > { %v809_v12 = vadd.f32 %v1126_v52, %v808_v25  ;;  %v847_v27 = vmax.f32 %v817_v22, 0.0 }
 0x23d   : > { %v1241_v28 = vpop.f32.mrf.mxu0 }
 0x23e   : > { %v845_v34 = vmax.f32 %v809_v12, 0.0  ;;  %v857_v48 = vpack.c.bf16 %v847_v27, %v846_v40  ;;  %v830_v16 = vadd.f32 %v1241_v28, %v1126_v52 }
 0x23f   : > { %v821_v41 = vpop.f32.mrf.mxu0 }
 0x240   : > { %v856_v46 = vpack.c.bf16 %v845_v34, %v844_v33  ;;  %v822_v50 = vadd.f32 %v1126_v52, %v821_v41  ;;  %v850_v57 = vmax.f32 %v830_v16, 0.0 }
 0x241   : > { %v1242_v49 = vpop.f32.mrf.mxu0 }
 0x242   : > { %v833_v51 = vadd.f32 %v1242_v49, %v1126_v52  ;;  %1255 = vmatprep.mubr.msk.bf16.mxu1 %vm876_vm5, %v856_v46  ;;  %v848_v55 = vmax.f32 %v822_v50, 0.0 }
 0x243   : > { %v824_v19 = vpop.f32.mrf.mxu0  ;;  %1256 = vmatmul.mubr.msk.bf16.gmra.mxu1 %vm876_vm5, %v857_v48 }
 0x244   : > { %v825_v53 = vadd.f32 %v1126_v52, %v824_v19  ;;  %v851_v54 = vmax.f32 %v833_v51, 0.0 }
 0x246   : > { %v849_v56 = vmax.f32 %v825_v53, 0.0  ;;  %v859_v59 = vpack.c.bf16 %v851_v54, %v850_v57 }
 0x248   : > { %v858_v58 = vpack.c.bf16 %v849_v56, %v848_v55 }
 0x24a   : > { %1259 = vmatprep.mubr.msk.bf16.mxu1 %vm876_vm5, %v858_v58 }
 0x24b   : > { %1260 = vmatmul.mubr.msk.bf16.gmra.mxu1 %vm876_vm5, %v859_v59 }
 0x2f3   : > { %v1249_v62 = vpop.f32.mrf.mxu1 }
 0x2f4   : > { %v950_v63 = vadd.f32 %v1249_v62, %v1135_v60 }
 0x2f5   : > { %v941_v20 = vpop.f32.mrf.mxu1 }
 0x2f6   : > { %v1006_v17 = vadd.f32 %v950_v63, %v1651_v29  ;;  %v942_v52 = vadd.f32 %v1135_v60, %v941_v20 }
 0x2f7   : > { %v1250_v18 = vpop.f32.mrf.mxu1 }
 0x2f8   : > { %1022 = vst.msk [vmem:[%s1812_s7 + $0x10] sm:$0xff] %vm702_vm4, %v1006_v17  ;;  %v1004_v24 = vadd.f32 %v942_v52, %v1631_v2  ;;  %v953_v26 = vadd.f32 %v1250_v18, %v1135_v60 }
 0x2f9   : > { %v944_v35 = vpop.f32.mrf.mxu1 }
 0x2fa   : > { %1020 = vst.msk [vmem:[%s1812_s7] sm:$0xff] %vm702_vm4, %v1004_v24  ;;  %v1007_v38 = vadd.f32 %v953_v26, %v1653_v30  ;;  %v945_v47 = vadd.f32 %v1135_v60, %v944_v35 }
 0x2fb   : > { %v1253_v29 = vpop.f32.mrf.mxu1 }
 0x2fc   : > { %1023 = vst.msk [vmem:[%s1812_s7 + $0x18] sm:$0xff] %vm702_vm4, %v1007_v38  ;;  %v1005_v61 = vadd.f32 %v945_v47, %v1635_v4  ;;  %v966_v1 = vadd.f32 %v1253_v29, %v1135_v60 }
 0x2fd   : > { %v957_v2 = vpop.f32.mrf.mxu1 }
 0x2fe   : > { %1021 = vst.msk [vmem:[%s1812_s7 + $0x8] sm:$0xff] %vm702_vm4, %v1005_v61  ;;  %v1010_v21 = vadd.f32 %v966_v1, %v1665_v36  ;;  %v958_v13 = vadd.f32 %v1135_v60, %v957_v2 }
 0x2ff   : > { %v1254_v30 = vpop.f32.mrf.mxu1 }
 0x300   : > { %1026 = vst.msk [vmem:[%s1812_s7 + $0x30] sm:$0xff] %vm702_vm4, %v1010_v21  ;;  %v1008_v0 = vadd.f32 %v958_v13, %v1655_v31  ;;  %v969_v3 = vadd.f32 %v1254_v30, %v1135_v60 }
 0x301   : > { %v960_v4 = vpop.f32.mrf.mxu1 }
 0x302   : > { %1024 = vst.msk [vmem:[%s1812_s7 + $0x20] sm:$0xff] %vm702_vm4, %v1008_v0  ;;  %v1011_v5 = vadd.f32 %v969_v3, %v1667_v37  ;;  %v961_v7 = vadd.f32 %v1135_v60, %v960_v4 }
 0x303   : > { %v1257_v36 = vpop.f32.mrf.mxu1 }
 0x304   : > { %1027 = vst.msk [vmem:[%s1812_s7 + $0x38] sm:$0xff] %vm702_vm4, %v1011_v5  ;;  %v1009_v8 = vadd.f32 %v961_v7, %v1657_v32  ;;  %v982_v9 = vadd.f32 %v1257_v36, %v1135_v60 }
 0x305   : > { %v973_v31 = vpop.f32.mrf.mxu1 }
 0x306   : > { %1025 = vst.msk [vmem:[%s1812_s7 + $0x28] sm:$0xff] %vm702_vm4, %v1009_v8  ;;  %v1014_v10 = vadd.f32 %v982_v9, %v1679_v42  ;;  %v974_v11 = vadd.f32 %v1135_v60, %v973_v31 }
 0x307   : > { %v1258_v37 = vpop.f32.mrf.mxu1 }
 0x308   : > { %1030 = vst.msk [vmem:[%s1812_s7 + $0x50] sm:$0xff] %vm702_vm4, %v1014_v10  ;;  %v1012_v22 = vadd.f32 %v974_v11, %v1669_v39  ;;  %v985_v23 = vadd.f32 %v1258_v37, %v1135_v60 }
 0x309   : > { %v976_v32 = vpop.f32.mrf.mxu1 }
 0x30a   : > { %1028 = vst.msk [vmem:[%s1812_s7 + $0x40] sm:$0xff] %vm702_vm4, %v1012_v22  ;;  %v1015_v25 = vadd.f32 %v985_v23, %v1681_v43  ;;  %v977_v12 = vadd.f32 %v1135_v60, %v976_v32 }
 0x30b   : > { %v1261_v42 = vpop.f32.mrf.mxu1 }
 0x30c   : > { %1031 = vst.msk [vmem:[%s1812_s7 + $0x58] sm:$0xff] %vm702_vm4, %v1015_v25  ;;  %v1013_v27 = vadd.f32 %v977_v12, %v1671_v14  ;;  %v998_v28 = vadd.f32 %v1261_v42, %v1135_v60 }
 0x30d   : > { %v989_v39 = vpop.f32.mrf.mxu1 }
 0x30e   : > { %1029 = vst.msk [vmem:[%s1812_s7 + $0x48] sm:$0xff] %vm702_vm4, %v1013_v27  ;;  %v1018_v33 = vadd.f32 %v998_v28, %v1693_v6  ;;  %v990_v34 = vadd.f32 %v1135_v60, %v989_v39 }
 0x30f   : > { %v1262_v43 = vpop.f32.mrf.mxu1 }
 0x310   : > { %1034 = vst.msk [vmem:[%s1812_s7 + $0x70] sm:$0xff] %vm702_vm4, %v1018_v33  ;;  %v1016_v40 = vadd.f32 %v990_v34, %v1683_v44  ;;  %v1001_v41 = vadd.f32 %v1262_v43, %v1135_v60 }
 0x311   : > { %v992_v14 = vpop.f32.mrf.mxu1 }
 0x312   : > { %1032 = vst.msk [vmem:[%s1812_s7 + $0x60] sm:$0xff] %vm702_vm4, %v1016_v40  ;;  %v1019_v46 = vadd.f32 %v1001_v41, %v1695_v15  ;;  %v993_v48 = vadd.f32 %v1135_v60, %v992_v14 }
 0x314   : > { %1035 = vst.msk [vmem:[%s1812_s7 + $0x78] sm:$0xff] %vm702_vm4, %v1019_v46  ;;  %v1017_v6 = vadd.f32 %v993_v48, %v1685_v45 }
 0x316   : > { %1033 = vst.msk [vmem:[%s1812_s7 + $0x68] sm:$0xff] %vm702_vm4, %v1017_v6 }
 0x317 PF: > { %s17_s26 = sadd.s32 1, %s1321_s26   ;;  %s1813_s24 = smov %s1317_s25 }
 0x318   : > { %p14_p6 = scmp.ge.s32.totalorder %s17_s26, 4   ;;  %s1814_s25 = smov %s1816_s27 }
 0x31a   :  { %16 = sbr.rel (!%p14_p6) target bundleno = 2 (0x2), region = 96 }

// kernel: mlp_layer_forward.2
= control target key start
LH: loop header
LB: loop body
LE: loop exit
PB: predicated region body
PF: predicated region fallthrough
CT: control target
= control target key end

     0   :  { %s1365_s24 = smov 0   ;;  %s1367_s25 = smov 0   ;;  %s1805_s0 = inlined_call_operand.vmem [shape: f32[128,32], index: 0, kind: input, shape index: {}]   ;;  %s1806_s1 = inlined_call_operand.vmem [shape: f32[1,32], index: 1, kind: input, shape index: {}]   ;;  %s1807_s2 = inlined_call_operand.vmem [shape: f32[1,32], index: 2, kind: input, shape index: {}]   ;;  %s1808_s3 = inlined_call_operand.vmem [shape: bf16[64,32], index: 3, kind: input, shape index: {}]   ;;  %s1809_s4 = inlined_call_operand.vmem [shape: f32[1,64], index: 4, kind: input, shape index: {}]   ;;  %s1810_s5 = inlined_call_operand.vmem [shape: bf16[32,64], index: 5, kind: input, shape index: {}]   ;;  %s1811_s6 = inlined_call_operand.vmem [shape: f32[1,32], index: 6, kind: input, shape index: {}]   ;;  %s1812_s7 = inlined_call_operand.vmem [shape: f32[128,32], index: 7, kind: output, shape index: {}]  }
   0x1   :  { %s1369_s26 = smov 0  }
   0x2 LB: > { %s29_s27 = sadd.s32 1, %s1317_s25  ;;  %p1113_p0 = scmp.ge.s32.totalorder %s1321_s26, 1  ;;  %s1321_s26 = sphi %s1369_s26, %s17_s26   ;;  %s1317_s25 = sphi %s1367_s25, %s1814_s25   ;;  %s1313_s24 = sphi %s1365_s24, %s1813_s24  }
   0x3   : > { %p31_p1 = scmp.ge.s32.totalorder %s29_s27, 2  ;;  %p260_p2 = scmp.lt.s32.totalorder %s1321_s26, 3 }
   0x5   : > { %s1816_s27 = smov (%p31_p1, %s29_s27), 0  ;;  %p261_p3 = pnand %p1113_p0, %p260_p2 }
   0x6   : > { %p1114_p4 = scmp.ne.s32.totalorder (!%p261_p3), %s1313_s24, 0 }
   0x7   : > { %264 = sbr.rel (%p261_p3) target bundleno = 791 (0x317), region = 48 }
   0xc   : > { %317 = sbr.rel (%p1114_p4) target bundleno = 315 (0x13b), region = 52 }
  0x11   : > { %v318_v0 = vld [vmem:[%s1805_s0] sm:$0xff]  ;;  %v319_v1 = vld [vmem:[%s1805_s0 + $0x8] sm:$0xff]  ;;  %v320_v2 = vld [vmem:[%s1805_s0 + $0x10] sm:$0xff]  ;;  %vm338_vm0 = vcmask 253952   ;;  %vm344_vm1 = vcmask 261120   ;;  %v1323_v6 = vmov 0.0  }
  0x12   : > { %v321_v3 = vld [vmem:[%s1805_s0 + $0x18] sm:$0xff]  ;;  %v322_v4 = vld [vmem:[%s1805_s0 + $0x20] sm:$0xff]  ;;  %v323_v5 = vld [vmem:[%s1805_s0 + $0x28] sm:$0xff]  ;;  %339 = vst.msk [vmem:[#allocation3] sm:$0x1] %vm338_vm0, %v318_v0  ;;  %1200 = vmatprep.subr.mxu0 %v1323_v6  ;;  %vm1324_vm2 = vmmov 0  }
  0x13   : > { %340 = vst.msk [vmem:[#allocation4] sm:$0x1] %vm338_vm0, %v1323_v6  ;;  %341 = vst.msk [vmem:[#allocation5] sm:$0x1] %vm338_vm0, %v1323_v6  ;;  %v324_v7 = vld [vmem:[%s1805_s0 + $0x30] sm:$0xff]  ;;  %v325_v8 = vld [vmem:[%s1805_s0 + $0x38] sm:$0xff]  ;;  %1216 = vmatprep.mubr.msk.f32.mxu0 %vm1324_vm2, %v1323_v6 }
  0x14   : > { %345 = vst.msk [vmem:[#allocation2] sm:$0xff] %vm344_vm1, %v318_v0  ;;  %346 = vst.msk [vmem:[#allocation2 + $0x8] sm:$0xff] %vm344_vm1, %v319_v1  ;;  %v326_v9 = vld [vmem:[%s1805_s0 + $0x40] sm:$0xff]  ;;  %v1429_v10 = vld [vmem:[%s1805_s0 + $0x48] sm:$0xff]  ;;  %vm646_vm3 = vcmask 516096  }
  0x15   : > { %347 = vst.msk [vmem:[#allocation2 + $0x10] sm:$0xff] %vm344_vm1, %v320_v2  ;;  %348 = vst.msk [vmem:[#allocation2 + $0x18] sm:$0xff] %vm344_vm1, %v321_v3  ;;  %v1434_v11 = vld [vmem:[%s1805_s0 + $0x50] sm:$0xff]  ;;  %v1439_v12 = vld [vmem:[%s1805_s0 + $0x58] sm:$0xff] }
  0x16   : > { %349 = vst.msk [vmem:[#allocation2 + $0x20] sm:$0xff] %vm344_vm1, %v322_v4  ;;  %350 = vst.msk [vmem:[#allocation2 + $0x28] sm:$0xff] %vm344_vm1, %v323_v5  ;;  %v1447_v13 = vld [vmem:[%s1805_s0 + $0x60] sm:$0xff]  ;;  %v1452_v14 = vld [vmem:[%s1805_s0 + $0x68] sm:$0xff] }
  0x17   : > { %351 = vst.msk [vmem:[#allocation2 + $0x30] sm:$0xff] %vm344_vm1, %v324_v7  ;;  %352 = vst.msk [vmem:[#allocation2 + $0x38] sm:$0xff] %vm344_vm1, %v325_v8  ;;  %v1457_v15 = vld [vmem:[%s1805_s0 + $0x70] sm:$0xff]  ;;  %v1468_v16 = vld [vmem:[%s1805_s0 + $0x78] sm:$0xff] }
  0x18   : > { %353 = vst.msk [vmem:[#allocation2 + $0x40] sm:$0xff] %vm344_vm1, %v326_v9  ;;  %354 = vst.msk [vmem:[#allocation2 + $0x48] sm:$0xff] %vm344_vm1, %v1429_v10  ;;  %v1479_v17 = vld [vmem:[%s1808_s3 + $0x18] sm:$0xff]   ;;  %v1497_v24 = vld [vmem:[%s1808_s3 + $0x10] sm:$0xff]  }
  0x19   : > { %355 = vst.msk [vmem:[#allocation2 + $0x50] sm:$0xff] %vm344_vm1, %v1434_v11  ;;  %356 = vst.msk [vmem:[#allocation2 + $0x58] sm:$0xff] %vm344_vm1, %v1439_v12  ;;  %v1165_v18 = vunpack.c.h.bf16 %v1479_v17  ;;  %v1484_v19 = vld [vmem:[#allocation3] ss:$0 sm:$0xff]  ;;  %v1164_v20 = vunpack.c.l.bf16 %v1479_v17  ;;  %v1161_v26 = vunpack.c.h.bf16 %v1497_v24  ;;  %v1160_v35 = vunpack.c.l.bf16 %v1497_v24  ;;  %v1521_v38 = vld [vmem:[%s1808_s3 + $0x8] sm:$0xff]  }
  0x1a   : > { %357 = vst.msk [vmem:[#allocation2 + $0x60] sm:$0xff] %vm344_vm1, %v1447_v13  ;;  %358 = vst.msk [vmem:[#allocation2 + $0x68] sm:$0xff] %vm344_vm1, %v1452_v14  ;;  %v368_v21 = vsub.f32 %v318_v0, %v1484_v19  ;;  %v369_v22 = vsub.f32 %v319_v1, %v1484_v19  ;;  %v370_v23 = vsub.f32 %v320_v2, %v1484_v19  ;;  %v1157_v47 = vunpack.c.h.bf16 %v1521_v38  ;;  %v1550_v1 = vld [vmem:[%s1808_s3] sm:$0xff]  }
  0x1b   : > { %359 = vst.msk [vmem:[#allocation2 + $0x70] sm:$0xff] %vm344_vm1, %v1457_v15  ;;  %360 = vst.msk [vmem:[#allocation2 + $0x78] sm:$0xff] %vm344_vm1, %v1468_v16  ;;  %1201 = vmatpush3.xpose.msk.msra.mxu0 %vm344_vm1, %v1165_v18  ;;  %v371_v25 = vsub.f32 %v321_v3, %v1484_v19  ;;  %v372_v27 = vsub.f32 %v322_v4, %v1484_v19  ;;  %v373_v32 = vsub.f32 %v323_v5, %v1484_v19  ;;  %v548_v24 = vld [vmem:[%s1809_s4] sm:$0x1] }
  0x1c   : > { %1202 = vmatprep.subr.mxu0 %v1323_v6  ;;  %v385_v28 = vsel %vm344_vm1, %v368_v21, 0.0  ;;  %v386_v29 = vsel %vm344_vm1, %v369_v22, 0.0  ;;  %v388_v30 = vsel %vm344_vm1, %v370_v23, 0.0  ;;  %v374_v36 = vsub.f32 %v324_v7, %v1484_v19 }
  0x1d   : > { %v387_v31 = vadd.f32 %v386_v29, %v385_v28  ;;  %v390_v33 = vsel %vm344_vm1, %v371_v25, 0.0  ;;  %v392_v37 = vsel %vm344_vm1, %v372_v27, 0.0  ;;  %v426_v40 = vmul.f32 %v368_v21, %v368_v21 }
  0x1e   : > { %v427_v41 = vmul.f32 %v369_v22, %v369_v22  ;;  %v428_v42 = vmul.f32 %v370_v23, %v370_v23  ;;  %v375_v43 = vsub.f32 %v325_v8, %v1484_v19  ;;  %v394_v44 = vsel %vm344_vm1, %v373_v32, 0.0 }
  0x1f   : > { %1203 = vmatpush3.xpose.msk.msra.mxu0 %vm344_vm1, %v1164_v20  ;;  %v389_v34 = vadd.f32 %v388_v30, %v387_v31  ;;  %v429_v46 = vmul.f32 %v371_v25, %v371_v25  ;;  %v376_v48 = vsub.f32 %v326_v9, %v1484_v19  ;;  %v396_v49 = vsel %vm344_vm1, %v374_v36, 0.0 }
  0x20   : > { %1204 = vmatprep.subr.mxu0 %v1323_v6  ;;  %v430_v50 = vmul.f32 %v372_v27, %v372_v27  ;;  %v442_v52 = vsel %vm344_vm1, %v426_v40, 0.0  ;;  %v443_v53 = vsel %vm344_vm1, %v427_v41, 0.0  ;;  %v445_v54 = vsel %vm344_vm1, %v428_v42, 0.0 }
  0x21   : > { %v391_v39 = vadd.f32 %v390_v33, %v389_v34  ;;  %v377_v55 = vsub.f32 %v1429_v10, %v1484_v19  ;;  %v398_v56 = vsel %vm344_vm1, %v375_v43, 0.0  ;;  %v444_v57 = vadd.f32 %v443_v53, %v442_v52 }
  0x22   : > { %v431_v59 = vmul.f32 %v373_v32, %v373_v32  ;;  %v447_v60 = vsel %vm344_vm1, %v429_v46, 0.0  ;;  %v1156_v61 = vunpack.c.l.bf16 %v1521_v38  ;;  %v378_v62 = vsub.f32 %v1434_v11, %v1484_v19 }
  0x23   : > { %1205 = vmatpush3.xpose.msk.msra.mxu0 %vm344_vm1, %v1161_v26  ;;  %v393_v45 = vadd.f32 %v392_v37, %v391_v39  ;;  %v400_v63 = vsel %vm344_vm1, %v376_v48, 0.0  ;;  %v446_v0 = vadd.f32 %v445_v54, %v444_v57  ;;  %v432_v3 = vmul.f32 %v374_v36, %v374_v36 }
  0x24   : > { %1206 = vmatprep.subr.mxu0 %v1323_v6  ;;  %v449_v4 = vsel %vm344_vm1, %v430_v50, 0.0  ;;  %v379_v5 = vsub.f32 %v1439_v12, %v1484_v19  ;;  %v402_v7 = vsel %vm344_vm1, %v377_v55, 0.0  ;;  %v433_v10 = vmul.f32 %v375_v43, %v375_v43 }
  0x25   : > { %v395_v51 = vadd.f32 %v394_v44, %v393_v45  ;;  %v448_v8 = vadd.f32 %v447_v60, %v446_v0  ;;  %v451_v11 = vsel %vm344_vm1, %v431_v59, 0.0  ;;  %v1153_v21 = vunpack.c.h.bf16 %v1550_v1 }
  0x26   : > { %v380_v22 = vsub.f32 %v1447_v13, %v1484_v19  ;;  %v404_v23 = vsel %vm344_vm1, %v378_v62, 0.0  ;;  %v434_v27 = vmul.f32 %v376_v48, %v376_v48  ;;  %v453_v28 = vsel %vm344_vm1, %v432_v3, 0.0 }
  0x27   : > { %1207 = vmatpush3.xpose.msk.msra.mxu0 %vm344_vm1, %v1160_v35  ;;  %v397_v58 = vadd.f32 %v396_v49, %v395_v51  ;;  %v450_v25 = vadd.f32 %v449_v4, %v448_v8  ;;  %v381_v29 = vsub.f32 %v1452_v14, %v1484_v19  ;;  %v406_v30 = vsel %vm344_vm1, %v379_v5, 0.0 }
  0x28   : > { %1208 = vmatprep.subr.mxu0 %v1323_v6  ;;  %v435_v33 = vmul.f32 %v377_v55, %v377_v55  ;;  %v455_v34 = vsel %vm344_vm1, %v433_v10, 0.0  ;;  %v1152_v13 = vunpack.c.l.bf16 %v1550_v1  ;;  %v382_v36 = vsub.f32 %v1457_v15, %v1484_v19 }
  0x29   : > { %v399_v2 = vadd.f32 %v398_v56, %v397_v58  ;;  %v452_v31 = vadd.f32 %v451_v11, %v450_v25  ;;  %v408_v37 = vsel %vm344_vm1, %v380_v22, 0.0  ;;  %v436_v40 = vmul.f32 %v378_v62, %v378_v62 }
  0x2a   : > { %v457_v41 = vsel %vm344_vm1, %v434_v27, 0.0  ;;  %v383_v42 = vsub.f32 %v1468_v16, %v1484_v19  ;;  %v410_v43 = vsel %vm344_vm1, %v381_v29, 0.0  ;;  %v437_v46 = vmul.f32 %v379_v5, %v379_v5 }
  0x2b   : > { %1209 = vmatpush3.xpose.msk.msra.mxu0 %vm344_vm1, %v1157_v47  ;;  %v401_v9 = vadd.f32 %v400_v63, %v399_v2  ;;  %v454_v39 = vadd.f32 %v453_v28, %v452_v31  ;;  %v459_v48 = vsel %vm344_vm1, %v435_v33, 0.0  ;;  %v438_v50 = vmul.f32 %v380_v22, %v380_v22  ;;  %v384_v22 = vld [vmem:[#allocation4] sm:$0x1] }
  0x2c   : > { %1210 = vmatprep.subr.mxu0 %v1323_v6  ;;  %v461_v51 = vsel %vm344_vm1, %v436_v40, 0.0  ;;  %v414_v16 = vsel %vm344_vm1, %v383_v42, 0.0  ;;  %v439_v53 = vmul.f32 %v381_v29, %v381_v29  ;;  %v463_v54 = vsel %vm344_vm1, %v437_v46, 0.0 }
  0x2d   : > { %v403_v12 = vadd.f32 %v402_v7, %v401_v9  ;;  %v456_v44 = vadd.f32 %v455_v34, %v454_v39  ;;  %v440_v57 = vmul.f32 %v382_v36, %v382_v36  ;;  %v465_v58 = vsel %vm344_vm1, %v438_v50, 0.0  ;;  %v500_v50 = vld [vmem:[%s1806_s1] sm:$0x1] }
  0x2e   : > { %v441_v62 = vmul.f32 %v383_v42, %v383_v42  ;;  %v467_v63 = vsel %vm344_vm1, %v439_v53, 0.0 }
  0x2f   : > { %1211 = vmatpush3.xpose.msk.msra.mxu0 %vm344_vm1, %v1156_v61  ;;  %v405_v32 = vadd.f32 %v404_v23, %v403_v12  ;;  %v458_v15 = vadd.f32 %v457_v41, %v456_v44  ;;  %v469_v3 = vsel %vm344_vm1, %v440_v57, 0.0 }
  0x30   : > { %1212 = vmatprep.subr.mxu0 %v1323_v6  ;;  %v471_v7 = vsel %vm344_vm1, %v441_v62, 0.0 }
  0x31   : > { %v407_v14 = vadd.f32 %v406_v30, %v405_v32  ;;  %v460_v19 = vadd.f32 %v459_v48, %v458_v15  ;;  %v484_v30 = vld [vmem:[#allocation3] sm:$0x1]  ;;  %v425_v32 = vld [vmem:[#allocation5] sm:$0x1]  ;;  %v522_v15 = vlaneseq }
  0x32   : > { %v486_v34 = vmul.f32 120.0, %v484_v30 }
  0x33   : > { %1213 = vmatpush3.xpose.msk.msra.mxu0 %vm344_vm1, %v1153_v21  ;;  %v409_v45 = vadd.f32 %v408_v37, %v407_v14  ;;  %v462_v55 = vadd.f32 %v461_v51, %v460_v19  ;;  %v489_v14 = vmul.f32 %v484_v30, %v484_v30 }
  0x34   : > { %1214 = vmatprep.subr.mxu0 %v1323_v6  ;;  %v412_v6 = vsel %vm344_vm1, %v382_v36, 0.0 }
  0x35   : > { %v411_v49 = vadd.f32 %v410_v43, %v409_v45  ;;  %v464_v59 = vadd.f32 %v463_v54, %v462_v55  ;;  %v490_v40 = vmul.f32 120.0, %v489_v14  ;;  %v502_v55 = vld [vmem:[%s1807_s2] sm:$0x1] }
  0x37   : > { %1215 = vmatpush3.xpose.msk.msra.mxu0 %vm344_vm1, %v1152_v13  ;;  %v413_v52 = vadd.f32 %v412_v6, %v411_v49  ;;  %v466_v0 = vadd.f32 %v465_v58, %v464_v59  ;;  %v523_v49 = vshrl.u32 %v522_v15, 7 }
  0x39   : > { %v415_v56 = vadd.f32 %v414_v16, %v413_v52  ;;  %v468_v4 = vadd.f32 %v467_v63, %v466_v0  ;;  %v524_v52 = vsub.s32 0, %v523_v49 }
  0x3b   : > { %v416_v60 = vrot.slane %v415_v56, 4  ;;  %v470_v8 = vadd.f32 %v469_v3, %v468_v4 }
  0x3d   : > { %v417_v2 = vadd.f32 %v416_v60, %v415_v56  ;;  %v472_v10 = vadd.f32 %v471_v7, %v470_v8 }
  0x3f   : > { %v418_v5 = vrot.slane %v417_v2, 2  ;;  %v473_v23 = vrot.slane %v472_v10, 4 }
  0x41   : > { %v419_v9 = vadd.f32 %v418_v5, %v417_v2  ;;  %v474_v12 = vadd.f32 %v473_v23, %v472_v10 }
  0x43   : > { %v420_v11 = vrot.slane %v419_v9, 1  ;;  %v475_v28 = vrot.slane %v474_v12, 2 }
  0x45   : > { %v421_v25 = vadd.f32 %v420_v11, %v419_v9  ;;  %v476_v29 = vadd.f32 %v475_v28, %v474_v12 }
  0x47   : > { %v422_v27 = vadd.f32 %v421_v25, %v384_v22  ;;  %v477_v31 = vrot.slane %v476_v29, 1 }
  0x49   : > { %424 = vst.msk [vmem:[#allocation4] sm:$0x1] %vm338_vm0, %v422_v27  ;;  %v478_v33 = vadd.f32 %v477_v31, %v476_v29 }
  0x4b   : > { %v479_v36 = vadd.f32 %v478_v33, %v425_v32 }
  0x4d   : > { %480 = vst.msk [vmem:[#allocation5] sm:$0x1] %vm338_vm0, %v479_v36 }
  0x50   : > { %v485_v37 = vld [vmem:[#allocation4] sm:$0x1] }
  0x51   : > { %v487_v39 = vadd.f32 %v486_v34, %v485_v37 }
  0x53   : > { %v492_v41 = vmul.f32 0.125, %v487_v39 }
  0x54   : > { %v488_v42 = vld [vmem:[#allocation5] sm:$0x1] }
  0x55   : > { %v491_v43 = vsub.f32 %v488_v42, %v490_v40  ;;  %v495_v44 = vmul.f32 %v492_v41, %v492_v41  ;;  %v493_v51 = vadd.f32 %v492_v41, %v484_v30 }
  0x57   : > { %v494_v45 = vmul.f32 0.125, %v491_v43 }
  0x59   : > { %v496_v46 = vsub.f32 %v494_v45, %v495_v44 }
  0x5b   : > { %v497_v48 = vmax.f32 %v496_v46, 0.0 }
  0x5d   : > { %v498_v6 = vadd.f32 1e-05, %v497_v48 }
  0x5f   : > { %1295 = vrsqrt.f32 %v498_v6 }
  0x6c   : > { %v1296_v16 = vpop.eup %1295 }
  0x6d   : > { %v501_v19 = vmul.f32 %v1296_v16, %v500_v50 }
  0x6f   : > { %v525_v53 = vrot.slane %v501_v19, %v524_v52  ;;  %v503_v54 = vmul.f32 %v501_v19, %v493_v51 }
  0x71   : > { %v533_v56 = vmul.f32 %v1164_v20, %v525_v53  ;;  %v534_v57 = vmul.f32 %v1165_v18, %v525_v53  ;;  %v532_v58 = vmul.f32 %v1161_v26, %v525_v53  ;;  %v531_v59 = vmul.f32 %v1160_v35, %v525_v53 }
  0x72   : > { %v530_v60 = vmul.f32 %v1157_v47, %v525_v53  ;;  %v529_v62 = vmul.f32 %v1156_v61, %v525_v53  ;;  %v528_v63 = vmul.f32 %v1153_v21, %v525_v53  ;;  %v527_v20 = vmul.f32 %v1152_v13, %v525_v53 }
  0x73   : > { %541 = vst.msk [vmem:[#allocation6 + $0x30] sm:$0xff] %vm344_vm1, %v533_v56  ;;  %542 = vst.msk [vmem:[#allocation6 + $0x38] sm:$0xff] %vm344_vm1, %v534_v57  ;;  %v504_v17 = vsub.f32 %v502_v55, %v503_v54 }
  0x74   : > { %540 = vst.msk [vmem:[#allocation6 + $0x28] sm:$0xff] %vm344_vm1, %v532_v58  ;;  %539 = vst.msk [vmem:[#allocation6 + $0x20] sm:$0xff] %vm344_vm1, %v531_v59 }
  0x75   : > { %538 = vst.msk [vmem:[#allocation6 + $0x18] sm:$0xff] %vm344_vm1, %v530_v60  ;;  %537 = vst.msk [vmem:[#allocation6 + $0x10] sm:$0xff] %vm344_vm1, %v529_v62  ;;  %v547_v18 = vrot.slane %v504_v17, %v524_v52 }
  0x76   : > { %536 = vst.msk [vmem:[#allocation6 + $0x8] sm:$0xff] %vm344_vm1, %v528_v63  ;;  %535 = vst.msk [vmem:[#allocation6] sm:$0xff] %vm344_vm1, %v527_v20 }
  0x77   : > { %1217 = vmatmul.mubr.msk.f32.vlgmr.msra.gmra.mxu0 %vm344_vm1, %v547_v18 }
 0x137   : > { %v641_v26 = vpop.f32.mrf.mxu0 }
 0x138   : > { %v645_v35 = vadd.f32 %v641_v26, %v548_v24 }
 0x139   : > { %v1218_v38 = vpop.f32.mrf.mxu0 }
 0x13a   : > { %647 = vst.msk [vmem:[#allocation7] sm:$0x1] %vm646_vm3, %v645_v35 }
 0x13b PF: > { %p1125_p5 = scmp.ne.s32.totalorder %s1313_s24, 1 }
 0x13d   : > { %651 = sbr.rel (%p1125_p5) target bundleno = 791 (0x317), region = 64 }
 0x142   : > { %v676_v47 = vld [vmem:[#allocation6 + $0x30] sm:$0xff]  ;;  %v677_v61 = vld [vmem:[#allocation6 + $0x38] sm:$0xff]  ;;  %vm702_vm4 = vcmask 261120   ;;  %v674_v1 = vld [vmem:[#allocation6 + $0x20] sm:$0xff]  ;;  %vm876_vm5 = vcmask 523264  }
 0x143   : > { %v695_v21 = vpack.c.bf16 %v677_v61, %v676_v47  ;;  %v675_v13 = vld [vmem:[#allocation6 + $0x28] sm:$0xff]  ;;  %v1631_v2 = vld [vmem:[#allocation2] sm:$0xff]  ;;  %v672_v7 = vld [vmem:[#allocation6 + $0x10] sm:$0xff] }
 0x144   : > { %v694_v0 = vpack.c.bf16 %v675_v13, %v674_v1  ;;  %v1635_v4 = vld [vmem:[#allocation2 + $0x8] sm:$0xff]  ;;  %v673_v8 = vld [vmem:[#allocation6 + $0x18] sm:$0xff]  ;;  %v1651_v29 = vld [vmem:[#allocation2 + $0x10] sm:$0xff] }
 0x145   : > { %1263 = vmatprep.subr.msk.bf16.mxu0 %vm702_vm4, %v695_v21  ;;  %v737_v3 = vsel %vm702_vm4, %v695_v21, 0  ;;  %v684_v5 = vpack.c.bf16 %v1635_v4, %v1631_v2  ;;  %v1297_v9 = vld [vmem:[%s1810_s5 + $0x8] sm:$0xff]   ;;  %v693_v11 = vpack.c.bf16 %v673_v8, %v672_v7  ;;  %v1653_v30 = vld [vmem:[#allocation2 + $0x18] sm:$0xff]  ;;  %v1655_v31 = vld [vmem:[#allocation2 + $0x20] sm:$0xff] }
 0x146   : > { %1220 = vmatpush3.bf16.xpose.msra.mxu0 %v737_v3  ;;  %v734_v10 = vsel %vm702_vm4, %v694_v0, 0  ;;  %1267 = vmatprep.subr.msk.bf16.mxu1 %vm876_vm5, %v1297_v9  ;;  %v905_v22 = vsel %vm876_vm5, %v1297_v9, 0  ;;  %v670_v23 = vld [vmem:[#allocation6] sm:$0xff]  ;;  %v671_v25 = vld [vmem:[#allocation6 + $0x8] sm:$0xff]  ;;  %v685_v33 = vpack.c.bf16 %v1653_v30, %v1651_v29  ;;  %v1667_v37 = vld [vmem:[#allocation2 + $0x38] sm:$0xff] }
 0x147   : > { %1264 = vmatprep.subr.msk.bf16.mxu0 %vm702_vm4, %v694_v0  ;;  %1227 = vmatprep.mubr.msk.bf16.mxu0 %vm702_vm4, %v684_v5  ;;  %v731_v12 = vsel %vm702_vm4, %v693_v11, 0  ;;  %v692_v27 = vpack.c.bf16 %v671_v25, %v670_v23  ;;  %v1657_v32 = vld [vmem:[#allocation2 + $0x28] sm:$0xff]  ;;  %v1665_v36 = vld [vmem:[#allocation2 + $0x30] sm:$0xff]  ;;  %v1669_v39 = vld [vmem:[#allocation2 + $0x40] sm:$0xff] }
 0x148   : > { %1244 = vmatpush3.bf16.xpose.msra.mxu1 %v905_v22  ;;  %v686_v34 = vpack.c.bf16 %v1657_v32, %v1655_v31  ;;  %v1671_v14 = vld [vmem:[#allocation2 + $0x48] sm:$0xff]  ;;  %v687_v40 = vpack.c.bf16 %v1667_v37, %v1665_v36  ;;  %v1679_v42 = vld [vmem:[#allocation2 + $0x50] sm:$0xff]  ;;  %v1681_v43 = vld [vmem:[#allocation2 + $0x58] sm:$0xff] }
 0x149   : > { %v728_v28 = vsel %vm702_vm4, %v692_v27, 0  ;;  %v688_v41 = vpack.c.bf16 %v1671_v14, %v1669_v39  ;;  %v1683_v44 = vld [vmem:[#allocation2 + $0x60] sm:$0xff]  ;;  %v1685_v45 = vld [vmem:[#allocation2 + $0x68] sm:$0xff]  ;;  %v689_v46 = vpack.c.bf16 %v1681_v43, %v1679_v42  ;;  %v1693_v6 = vld [vmem:[#allocation2 + $0x70] sm:$0xff] }
 0x14a   : > { %v690_v48 = vpack.c.bf16 %v1685_v45, %v1683_v44  ;;  %v1695_v15 = vld [vmem:[#allocation2 + $0x78] sm:$0xff]  ;;  %v1298_v50 = vld [vmem:[%s1810_s5] sm:$0xff]  }
 0x14b   : > { %v691_v49 = vpack.c.bf16 %v1695_v15, %v1693_v6  ;;  %1268 = vmatprep.subr.msk.bf16.mxu1 %vm876_vm5, %v1298_v50  ;;  %v902_v51 = vsel %vm876_vm5, %v1298_v50, 0  ;;  %v1126_v52 = vld [vmem:[#allocation7] ss:$0 sm:$0xff] }
 0x14e   : > { %1222 = vmatpush3.bf16.xpose.msra.mxu0 %v734_v10 }
 0x14f   : > { %1265 = vmatprep.subr.msk.bf16.mxu0 %vm702_vm4, %v693_v11 }
 0x150   : > { %1246 = vmatpush3.bf16.xpose.msra.mxu1 %v902_v51 }
 0x156   : > { %1224 = vmatpush3.bf16.xpose.msra.mxu0 %v731_v12 }
 0x157   : > { %1266 = vmatprep.subr.msk.bf16.mxu0 %vm702_vm4, %v692_v27 }
 0x15e   : > { %1226 = vmatpush3.bf16.xpose.msra.mxu0 %v728_v28 }
 0x165   : > { %1228 = vmatmul.mubr.msk.bf16.vlgmr.msra.gmra.mxu0 %vm702_vm4, %v685_v33 }
 0x166   : > { %1231 = vmatprep.mubr.msk.bf16.mxu0 %vm702_vm4, %v686_v34 }
 0x16d   : > { %1232 = vmatmul.mubr.msk.bf16.gmra.mxu0 %vm702_vm4, %v687_v40 }
 0x16e   : > { %1235 = vmatprep.mubr.msk.bf16.mxu0 %vm702_vm4, %v688_v41 }
 0x175   : > { %1236 = vmatmul.mubr.msk.bf16.gmra.mxu0 %vm702_vm4, %v689_v46 }
 0x176   : > { %1239 = vmatprep.mubr.msk.bf16.mxu0 %vm702_vm4, %v690_v48 }
 0x17d   : > { %1240 = vmatmul.mubr.msk.bf16.gmra.mxu0 %vm702_vm4, %v691_v49 }
 0x225   : > { %v1229_v16 = vpop.f32.mrf.mxu0 }
 0x226   : > { %v782_v56 = vadd.f32 %v1229_v16, %v1126_v52 }
 0x227   : > { %v773_v19 = vpop.f32.mrf.mxu0 }
 0x228   : > { %v774_v54 = vadd.f32 %v1126_v52, %v773_v19  ;;  %v838_v20 = vmax.f32 %v782_v56, 0.0 }
 0x229   : > { %v1230_v53 = vpop.f32.mrf.mxu0 }
 0x22a   : > { %v785_v55 = vadd.f32 %v1230_v53, %v1126_v52  ;;  %v836_v62 = vmax.f32 %v774_v54, 0.0 }
 0x22b   : > { %v776_v57 = vpop.f32.mrf.mxu0 }
 0x22c   : > { %v777_v58 = vadd.f32 %v1126_v52, %v776_v57  ;;  %v839_v59 = vmax.f32 %v785_v55, 0.0 }
 0x22d   : > { %v1233_v60 = vpop.f32.mrf.mxu0 }
 0x22e   : > { %v837_v63 = vmax.f32 %v777_v58, 0.0  ;;  %v853_v24 = vpack.c.bf16 %v839_v59, %v838_v20  ;;  %v798_v47 = vadd.f32 %v1233_v60, %v1126_v52  ;;  %v1135_v60 = vld [vmem:[%s1811_s6] ss:$0 sm:$0xff] }
 0x22f   : > { %v789_v17 = vpop.f32.mrf.mxu0 }
 0x230   : > { %v852_v18 = vpack.c.bf16 %v837_v63, %v836_v62  ;;  %v790_v35 = vadd.f32 %v1126_v52, %v789_v17  ;;  %v842_v5 = vmax.f32 %v798_v47, 0.0 }
 0x231   : > { %v1234_v26 = vpop.f32.mrf.mxu0 }
 0x232   : > { %v801_v38 = vadd.f32 %v1234_v26, %v1126_v52  ;;  %1247 = vmatprep.mubr.msk.bf16.mxu1 %vm876_vm5, %v852_v18  ;;  %v840_v0 = vmax.f32 %v790_v35, 0.0 }
 0x233   : > { %v792_v61 = vpop.f32.mrf.mxu0  ;;  %1248 = vmatmul.mubr.msk.bf16.vlgmr.msra.gmra.mxu1 %vm876_vm5, %v853_v24 }
 0x234   : > { %v793_v1 = vadd.f32 %v1126_v52, %v792_v61  ;;  %v843_v21 = vmax.f32 %v801_v38, 0.0 }
 0x235   : > { %v1237_v13 = vpop.f32.mrf.mxu0 }
 0x236   : > { %v841_v3 = vmax.f32 %v793_v1, 0.0  ;;  %v855_v9 = vpack.c.bf16 %v843_v21, %v842_v5  ;;  %v814_v23 = vadd.f32 %v1237_v13, %v1126_v52 }
 0x237   : > { %v805_v7 = vpop.f32.mrf.mxu0 }
 0x238   : > { %v854_v8 = vpack.c.bf16 %v841_v3, %v840_v0  ;;  %v806_v11 = vadd.f32 %v1126_v52, %v805_v7  ;;  %v846_v40 = vmax.f32 %v814_v23, 0.0 }
 0x239   : > { %v1238_v10 = vpop.f32.mrf.mxu0 }
 0x23a   : > { %v817_v22 = vadd.f32 %v1238_v10, %v1126_v52  ;;  %1251 = vmatprep.mubr.msk.bf16.mxu1 %vm876_vm5, %v854_v8  ;;  %v844_v33 = vmax.f32 %v806_v11, 0.0 }
 0x23b   : > { %v808_v25 = vpop.f32.mrf.mxu0  ;;  %1252 = vmatmul.mubr.msk.bf16.gmra.mxu1 %vm876_vm5, %v855_v9 }
 0x23c   : > { %v809_v12 = vadd.f32 %v1126_v52, %v808_v25  ;;  %v847_v27 = vmax.f32 %v817_v22, 0.0 }
 0x23d   : > { %v1241_v28 = vpop.f32.mrf.mxu0 }
 0x23e   : > { %v845_v34 = vmax.f32 %v809_v12, 0.0  ;;  %v857_v48 = vpack.c.bf16 %v847_v27, %v846_v40  ;;  %v830_v16 = vadd.f32 %v1241_v28, %v1126_v52 }
 0x23f   : > { %v821_v41 = vpop.f32.mrf.mxu0 }
 0x240   : > { %v856_v46 = vpack.c.bf16 %v845_v34, %v844_v33  ;;  %v822_v50 = vadd.f32 %v1126_v52, %v821_v41  ;;  %v850_v57 = vmax.f32 %v830_v16, 0.0 }
 0x241   : > { %v1242_v49 = vpop.f32.mrf.mxu0 }
 0x242   : > { %v833_v51 = vadd.f32 %v1242_v49, %v1126_v52  ;;  %1255 = vmatprep.mubr.msk.bf16.mxu1 %vm876_vm5, %v856_v46  ;;  %v848_v55 = vmax.f32 %v822_v50, 0.0 }
 0x243   : > { %v824_v19 = vpop.f32.mrf.mxu0  ;;  %1256 = vmatmul.mubr.msk.bf16.gmra.mxu1 %vm876_vm5, %v857_v48 }
 0x244   : > { %v825_v53 = vadd.f32 %v1126_v52, %v824_v19  ;;  %v851_v54 = vmax.f32 %v833_v51, 0.0 }
 0x246   : > { %v849_v56 = vmax.f32 %v825_v53, 0.0  ;;  %v859_v59 = vpack.c.bf16 %v851_v54, %v850_v57 }
 0x248   : > { %v858_v58 = vpack.c.bf16 %v849_v56, %v848_v55 }
 0x24a   : > { %1259 = vmatprep.mubr.msk.bf16.mxu1 %vm876_vm5, %v858_v58 }
 0x24b   : > { %1260 = vmatmul.mubr.msk.bf16.gmra.mxu1 %vm876_vm5, %v859_v59 }
 0x2f3   : > { %v1249_v62 = vpop.f32.mrf.mxu1 }
 0x2f4   : > { %v950_v63 = vadd.f32 %v1249_v62, %v1135_v60 }
 0x2f5   : > { %v941_v20 = vpop.f32.mrf.mxu1 }
 0x2f6   : > { %v1006_v17 = vadd.f32 %v950_v63, %v1651_v29  ;;  %v942_v52 = vadd.f32 %v1135_v60, %v941_v20 }
 0x2f7   : > { %v1250_v18 = vpop.f32.mrf.mxu1 }
 0x2f8   : > { %1022 = vst.msk [vmem:[%s1812_s7 + $0x10] sm:$0xff] %vm702_vm4, %v1006_v17  ;;  %v1004_v24 = vadd.f32 %v942_v52, %v1631_v2  ;;  %v953_v26 = vadd.f32 %v1250_v18, %v1135_v60 }
 0x2f9   : > { %v944_v35 = vpop.f32.mrf.mxu1 }
 0x2fa   : > { %1020 = vst.msk [vmem:[%s1812_s7] sm:$0xff] %vm702_vm4, %v1004_v24  ;;  %v1007_v38 = vadd.f32 %v953_v26, %v1653_v30  ;;  %v945_v47 = vadd.f32 %v1135_v60, %v944_v35 }
 0x2fb   : > { %v1253_v29 = vpop.f32.mrf.mxu1 }
 0x2fc   : > { %1023 = vst.msk [vmem:[%s1812_s7 + $0x18] sm:$0xff] %vm702_vm4, %v1007_v38  ;;  %v1005_v61 = vadd.f32 %v945_v47, %v1635_v4  ;;  %v966_v1 = vadd.f32 %v1253_v29, %v1135_v60 }
 0x2fd   : > { %v957_v2 = vpop.f32.mrf.mxu1 }
 0x2fe   : > { %1021 = vst.msk [vmem:[%s1812_s7 + $0x8] sm:$0xff] %vm702_vm4, %v1005_v61  ;;  %v1010_v21 = vadd.f32 %v966_v1, %v1665_v36  ;;  %v958_v13 = vadd.f32 %v1135_v60, %v957_v2 }
 0x2ff   : > { %v1254_v30 = vpop.f32.mrf.mxu1 }
 0x300   : > { %1026 = vst.msk [vmem:[%s1812_s7 + $0x30] sm:$0xff] %vm702_vm4, %v1010_v21  ;;  %v1008_v0 = vadd.f32 %v958_v13, %v1655_v31  ;;  %v969_v3 = vadd.f32 %v1254_v30, %v1135_v60 }
 0x301   : > { %v960_v4 = vpop.f32.mrf.mxu1 }
 0x302   : > { %1024 = vst.msk [vmem:[%s1812_s7 + $0x20] sm:$0xff] %vm702_vm4, %v1008_v0  ;;  %v1011_v5 = vadd.f32 %v969_v3, %v1667_v37  ;;  %v961_v7 = vadd.f32 %v1135_v60, %v960_v4 }
 0x303   : > { %v1257_v36 = vpop.f32.mrf.mxu1 }
 0x304   : > { %1027 = vst.msk [vmem:[%s1812_s7 + $0x38] sm:$0xff] %vm702_vm4, %v1011_v5  ;;  %v1009_v8 = vadd.f32 %v961_v7, %v1657_v32  ;;  %v982_v9 = vadd.f32 %v1257_v36, %v1135_v60 }
 0x305   : > { %v973_v31 = vpop.f32.mrf.mxu1 }
 0x306   : > { %1025 = vst.msk [vmem:[%s1812_s7 + $0x28] sm:$0xff] %vm702_vm4, %v1009_v8  ;;  %v1014_v10 = vadd.f32 %v982_v9, %v1679_v42  ;;  %v974_v11 = vadd.f32 %v1135_v60, %v973_v31 }
 0x307   : > { %v1258_v37 = vpop.f32.mrf.mxu1 }
 0x308   : > { %1030 = vst.msk [vmem:[%s1812_s7 + $0x50] sm:$0xff] %vm702_vm4, %v1014_v10  ;;  %v1012_v22 = vadd.f32 %v974_v11, %v1669_v39  ;;  %v985_v23 = vadd.f32 %v1258_v37, %v1135_v60 }
 0x309   : > { %v976_v32 = vpop.f32.mrf.mxu1 }
 0x30a   : > { %1028 = vst.msk [vmem:[%s1812_s7 + $0x40] sm:$0xff] %vm702_vm4, %v1012_v22  ;;  %v1015_v25 = vadd.f32 %v985_v23, %v1681_v43  ;;  %v977_v12 = vadd.f32 %v1135_v60, %v976_v32 }
 0x30b   : > { %v1261_v42 = vpop.f32.mrf.mxu1 }
 0x30c   : > { %1031 = vst.msk [vmem:[%s1812_s7 + $0x58] sm:$0xff] %vm702_vm4, %v1015_v25  ;;  %v1013_v27 = vadd.f32 %v977_v12, %v1671_v14  ;;  %v998_v28 = vadd.f32 %v1261_v42, %v1135_v60 }
 0x30d   : > { %v989_v39 = vpop.f32.mrf.mxu1 }
 0x30e   : > { %1029 = vst.msk [vmem:[%s1812_s7 + $0x48] sm:$0xff] %vm702_vm4, %v1013_v27  ;;  %v1018_v33 = vadd.f32 %v998_v28, %v1693_v6  ;;  %v990_v34 = vadd.f32 %v1135_v60, %v989_v39 }
 0x30f   : > { %v1262_v43 = vpop.f32.mrf.mxu1 }
 0x310   : > { %1034 = vst.msk [vmem:[%s1812_s7 + $0x70] sm:$0xff] %vm702_vm4, %v1018_v33  ;;  %v1016_v40 = vadd.f32 %v990_v34, %v1683_v44  ;;  %v1001_v41 = vadd.f32 %v1262_v43, %v1135_v60 }
 0x311   : > { %v992_v14 = vpop.f32.mrf.mxu1 }
 0x312   : > { %1032 = vst.msk [vmem:[%s1812_s7 + $0x60] sm:$0xff] %vm702_vm4, %v1016_v40  ;;  %v1019_v46 = vadd.f32 %v1001_v41, %v1695_v15  ;;  %v993_v48 = vadd.f32 %v1135_v60, %v992_v14 }
 0x314   : > { %1035 = vst.msk [vmem:[%s1812_s7 + $0x78] sm:$0xff] %vm702_vm4, %v1019_v46  ;;  %v1017_v6 = vadd.f32 %v993_v48, %v1685_v45 }
 0x316   : > { %1033 = vst.msk [vmem:[%s1812_s7 + $0x68] sm:$0xff] %vm702_vm4, %v1017_v6 }
 0x317 PF: > { %s17_s26 = sadd.s32 1, %s1321_s26   ;;  %s1813_s24 = smov %s1317_s25 }
 0x318   : > { %p14_p6 = scmp.ge.s32.totalorder %s17_s26, 4   ;;  %s1814_s25 = smov %s1816_s27 }
 0x31a   :  { %16 = sbr.rel (!%p14_p6) target bundleno = 2 (0x2), region = 96 }

</bundles_post_ra>
